<compile_context>
chip_gen: v6e
topology: v6e:2x2x1
jax: 0.10.0
libtpu: 0.0.40
codegen_flags: <defaults>
</compile_context>

<pallas_src>
import functools
from typing import NamedTuple

import numpy as np
import jax
import jax.numpy as jnp
from jax import lax
from jax.experimental import pallas as pl
from jax.experimental.pallas import tpu as pltpu

PADDING = 3


class ConvCfg(NamedTuple):
    kc: int      # conv kernel size
    sc: int      # conv stride
    kp: int      # pool kernel size
    sp: int      # pool stride
    pad: int     # conv zero padding
    h_out: int   # conv output height
    hlim: int    # h_out - kp + 1 (un-decimated pooled height)
    wlim: int    # w_out - kp + 1 (un-decimated pooled width)
    c_out: int   # conv output channels
    l_in: int    # lane width of this layer's input activation
    n_out: int   # w_out * c_out (lane width of the conv output)


# -----------------------------------------------------------------------------
# Kernel
# -----------------------------------------------------------------------------
def _make_kernel(conv_cfgs, num_fc):
    def kernel(*refs):
        x_ref, o_ref = refs[0], refs[-1]
        params = refs[1:-1]

        # (H0 + 2*pad, W0*C0); layer-1 H halo pad is done by the wrapper.
        a = x_ref[0]
        pi = 0
        for cfg in conv_cfgs:
            b_ref, bias_ref, hsel_ref = params[pi], params[pi + 1], params[pi + 2]
            pi += 3

            # --- Conv over W: one banded MXU matmul per row tap kh -----------
            def rows(kh, a=a, cfg=cfg):
                if cfg.sc == 1:
                    return a[kh:kh + cfg.h_out, :]
                # TODO(synk): stride_conv > 1 path (strided row slice) is not
                # exercised by the test config.
                return lax.slice(a, (kh, 0),
                                 (kh + cfg.sc * (cfg.h_out - 1) + 1, cfg.l_in),
                                 (cfg.sc, 1))

            acc = jnp.dot(rows(0), b_ref[0], preferred_element_type=jnp.float32)
            for kh in range(1, cfg.kc):
                acc = acc + jnp.dot(rows(kh), b_ref[kh],
                                    preferred_element_type=jnp.float32)
            y = jnp.maximum(acc + bias_ref[...], 0.0)       # bias + ReLU epilogue

            # --- MaxPool, H direction ----------------------------------------
            # Window max over kp contiguous row slices, then one 0/1 selection
            # matmul that decimates rows by sp and (for non-final layers) also
            # inserts the next layer's H zero-pad rows.
            ym = y[0:cfg.hlim, :]
            for ph in range(1, cfg.kp):
                ym = jnp.maximum(ym, y[ph:ph + cfg.hlim, :])
            ym = jnp.dot(hsel_ref[...], ym, preferred_element_type=jnp.float32)

            # --- MaxPool, W direction ------------------------------------------
            # Window max over kp shifted lane slices; the stride-sp decimation
            # is folded into the next consumer's weights (zero rows for the
            # non-selected lane groups), so it costs nothing here.
            a = ym[:, 0:cfg.wlim * cfg.c_out]
            for pw in range(1, cfg.kp):
                a = jnp.maximum(
                    a, ym[:, pw * cfg.c_out:(pw + cfg.wlim) * cfg.c_out])

        # --- First FC: flatten + NCHW permutation + W-pool decimation are all
        # folded into the 3-D weight (rows, lanes, d_out); contract row by row.
        wfc_ref, bfc_ref = params[pi], params[pi + 1]
        pi += 2
        z = bfc_ref[...]
        for r in range(wfc_ref.shape[0]):
            z = z + jnp.dot(a[r:r + 1, :], wfc_ref[r],
                            preferred_element_type=jnp.float32)
        z = jnp.maximum(z, 0.0)

        # --- Remaining FC layers ------------------------------------------------
        for _ in range(num_fc - 1):
            w_ref, b_ref2 = params[pi], params[pi + 1]
            pi += 2
            z = jnp.maximum(
                jnp.dot(z, w_ref[...], preferred_element_type=jnp.float32)
                + b_ref2[...], 0.0)

        assert pi == len(params)
        o_ref[0] = z.astype(o_ref.dtype)

    return kernel


# -----------------------------------------------------------------------------
# One-time parameter preparation (plain numpy; hoisted out of the jitted call).
# -----------------------------------------------------------------------------
def prepare_cnn_params(conv_params, lin_params, *, size, stride_conv,
                       kernel_pool, stride_pool, padding=PADDING):
    sc, kp, sp, pad = stride_conv, kernel_pool, stride_pool, padding
    n_conv = len(conv_params)

    packed = []
    cfgs = []

    h_in, w_in = size, size
    c_in = conv_params[0][0].shape[1]
    # lane_of[w, c] = lane index of logical (w, c) in the current activation.
    lane_of = np.arange(w_in * c_in, dtype=np.int64).reshape(w_in, c_in)
    l_in = w_in * c_in

    for li, (w_conv, bias) in enumerate(conv_params):
        w_np = np.asarray(jax.device_get(w_conv), np.float32)  # (c_out,c_in,kc,kc)
        b_np = np.asarray(jax.device_get(bias), np.float32)
        c_out, c_in_l, kc, _ = w_np.shape
        assert c_in_l == c_in

        h_out = (h_in - kc + 2 * pad) // sc + 1
        w_out = (w_in - kc + 2 * pad) // sc + 1
        n_out = w_out * c_out

        # Banded W-direction conv matrices (W zero-padding = missing rows).
        B = np.zeros((kc, l_in, n_out), np.float32)
        for kh in range(kc):
            for ow in range(w_out):
                for kw in range(kc):
                    iw = ow * sc + kw - pad
                    if 0 <= iw < w_in:
                        for ci in range(c_in):
                            B[kh, lane_of[iw, ci],
                              ow * c_out:(ow + 1) * c_out] = w_np[:, ci, kh, kw]
        bias_row = np.tile(b_np, w_out)[None, :]                # (1, n_out)

        h_p = (h_out - kp) // sp + 1
        w_p = (w_out - kp) // sp + 1
        hlim = h_out - kp + 1
        wlim = w_out - kp + 1
        # H selection: decimate pooled rows by sp; non-final layers also get the
        # next layer's H zero-pad rows for free (zero rows of hsel).
        row_off = pad if li < n_conv - 1 else 0
        hsel = np.zeros((h_p + 2 * row_off, hlim), np.float32)
        hsel[row_off + np.arange(h_p), sp * np.arange(h_p)] = 1.0

        packed += [jnp.asarray(B), jnp.asarray(bias_row), jnp.asarray(hsel)]
        cfgs.append(ConvCfg(kc=kc, sc=sc, kp=kp, sp=sp, pad=pad, h_out=h_out,
                            hlim=hlim, wlim=wlim, c_out=c_out, l_in=l_in,
                            n_out=n_out))

        # Next layer's input layout: H decimated (+padded); W un-decimated with
        # valid column iw living at lanes sp*iw*c_out + [0, c_out).
        lane_of = (sp * np.arange(w_p, dtype=np.int64)[:, None] * c_out
                   + np.arange(c_out, dtype=np.int64)[None, :])
        l_in = wlim * c_out
        h_in, w_in, c_in = h_p, w_p, c_out

    # First FC: fold torch's NCHW flatten + W-pool decimation into the weight.
    w1, b1 = lin_params[0]
    w1_np = np.asarray(jax.device_get(w1), np.float32)          # (d_out, d_in)
    d_out = w1_np.shape[0]
    assert w1_np.shape[1] == c_in * h_in * w_in
    wfc = np.zeros((h_in, l_in, d_out), np.float32)
    for ci in range(c_in):
        for oh in range(h_in):
            for ow in range(w_in):
                col = ci * (h_in * w_in) + oh * w_in + ow       # NCHW flatten index
                wfc[oh, lane_of[ow, ci], :] = w1_np[:, col]
    packed += [jnp.asarray(wfc),
               jnp.asarray(np.asarray(jax.device_get(b1), np.float32)[None, :])]

    # Remaining FC layers: plain (d_in, d_out) matmuls.
    for w_l, b_l in lin_params[1:]:
        packed += [jnp.asarray(np.asarray(jax.device_get(w_l), np.float32).T),
                   jnp.asarray(np.asarray(jax.device_get(b_l), np.float32)[None, :])]

    return tuple(packed), tuple(cfgs), len(lin_params)


# -----------------------------------------------------------------------------
# Forward pass (single pallas_call, grid over batch) and pure-JAX reference.
# -----------------------------------------------------------------------------
@functools.partial(jax.jit, static_argnames=("conv_cfgs", "num_fc", "d_final"))
def cnn_forward(x_nchw, packed_params, *, conv_cfgs, num_fc, d_final):
    n, c, h, w = x_nchw.shape
    pad = conv_cfgs[0].pad
    # NCHW -> merged-lane (N, H, W*C) + layer-1 H halo pad (fused into the
    # input copy by XLA).  W padding never materializes (folded into B).
    x = jnp.transpose(x_nchw, (0, 2, 3, 1)).astype(jnp.float32).reshape(n, h, w * c)
    x = jnp.pad(x, ((0, 0), (pad, pad), (0, 0)))

    kernel = _make_kernel(conv_cfgs, num_fc)
    in_specs = [pl.BlockSpec((1, x.shape[1], x.shape[2]), lambda b: (b, 0, 0))]
    for p in packed_params:
        in_specs.append(pl.BlockSpec(p.shape, lambda b, nd=p.ndim: (0,) * nd))

    out = pl.pallas_call(
        kernel,
        grid=(n,),
        in_specs=in_specs,
        out_specs=pl.BlockSpec((1, 1, d_final), lambda b: (b, 0, 0)),
        out_shape=jax.ShapeDtypeStruct((n, 1, d_final), jnp.float32),
        compiler_params=pltpu.CompilerParams(
            dimension_semantics=("parallel",),
            vmem_limit_bytes=32 * 1024 * 1024),
    )(x, *packed_params)
    return out.reshape(n, d_final)


def cnn_reference(x, conv_params, lin_params, *, stride_conv, kernel_pool,
                  stride_pool):
    for w, b in conv_params:
        x = lax.conv_general_dilated(
            x, w, (stride_conv, stride_conv),
            [(PADDING, PADDING), (PADDING, PADDING)],
            dimension_numbers=("NCHW", "OIHW", "NCHW"),
            precision=lax.Precision.HIGHEST)
        x = jnp.maximum(x + b[None, :, None, None], 0.0)
        x = lax.reduce_window(
            x, -jnp.inf, lax.max,
            (1, 1, kernel_pool, kernel_pool),
            (1, 1, stride_pool, stride_pool), "VALID")
    x = x.reshape(x.shape[0], -1)
    for w, b in lin_params:
        x = jnp.maximum(jnp.dot(x, w.T, precision=lax.Precision.HIGHEST) + b, 0.0)
    return x


if __name__ == "__main__":
    # Small config consistent with the torch module's constructor.
    size = 16
    channels = [4, 8, 16]
    shapes = [32, 10]
    kernel_size_conv = 5
    stride_size_conv = 1
    kernel_size_pool = 2
    stride_size_pool = 2

    key = jax.random.PRNGKey(0)

    # Deterministic Xavier-uniform init (same scheme as CNN.initialize), zero bias.
    conv_params = []
    for c_in, c_out in zip(channels[:-1], channels[1:]):
        key, wk = jax.random.split(key)
        fan_in = c_in * kernel_size_conv * kernel_size_conv
        fan_out = c_out * kernel_size_conv * kernel_size_conv
        a = (6.0 / (fan_in + fan_out)) ** 0.5
        w = jax.random.uniform(
            wk, (c_out, c_in, kernel_size_conv, kernel_size_conv),
            jnp.float32, -a, a)
        conv_params.append((w, jnp.zeros((c_out,), jnp.float32)))

    # Same flatten-size arithmetic as the torch __init__.
    h = w_dim = size
    for _ in range(len(channels) - 1):
        h = (h - kernel_size_conv + 2 * PADDING) // stride_size_conv + 1
        w_dim = (w_dim - kernel_size_conv + 2 * PADDING) // stride_size_conv + 1
        h = (h - kernel_size_pool) // stride_size_pool + 1
        w_dim = (w_dim - kernel_size_pool) // stride_size_pool + 1
    fcs_input = h * w_dim * channels[-1]
    lin_shapes = [fcs_input] + shapes

    lin_params = []
    for d_in, d_out in zip(lin_shapes[:-1], lin_shapes[1:]):
        key, wk = jax.random.split(key)
        a = (6.0 / (d_in + d_out)) ** 0.5
        w = jax.random.uniform(wk, (d_out, d_in), jnp.float32, -a, a)
        lin_params.append((w, jnp.zeros((d_out,), jnp.float32)))

    key, xk = jax.random.split(key)
    x = jax.random.normal(xk, (2, channels[0], size, size), jnp.float32)

    # One-time parameter prep (hoisted out of the jitted forward).
    packed, conv_cfgs, num_fc = prepare_cnn_params(
        conv_params, lin_params, size=size, stride_conv=stride_size_conv,
        kernel_pool=kernel_size_pool, stride_pool=stride_size_pool)

    out = cnn_forward(x, packed, conv_cfgs=conv_cfgs, num_fc=num_fc,
                      d_final=shapes[-1])
    out = jax.block_until_ready(out)

    ref = cnn_reference(x, conv_params, lin_params,
                        stride_conv=stride_size_conv,
                        kernel_pool=kernel_size_pool,
                        stride_pool=stride_size_pool)

    assert out.shape == (2, shapes[-1]), out.shape
    assert out.dtype == jnp.float32
    err = float(jnp.max(jnp.abs(out - ref)))
    # Kernel matmuls run at DEFAULT (single-pass bf16 MXU) precision per the
    # perf review; the reference is exact f32, so allow bf16-level noise while
    # still catching any structural/layout bug (which would be O(0.5) here).
    assert err < 5e-2, f"max abs err {err}"
    print("KERNEL_OK")
</pallas_src>

<mosaic_0001>
module attributes {stable_mosaic.version = 11 : i64} {
  func.func @kernel(%arg0: i32, %arg1: memref<1x22x64xf32, #tpu.memory_space<vmem>>, %arg2: memref<5x64x144xf32, #tpu.memory_space<vmem>>, %arg3: memref<1x144xf32, #tpu.memory_space<vmem>>, %arg4: memref<15x17xf32, #tpu.memory_space<vmem>>, %arg5: memref<5x136x176xf32, #tpu.memory_space<vmem>>, %arg6: memref<1x176xf32, #tpu.memory_space<vmem>>, %arg7: memref<5x10xf32, #tpu.memory_space<vmem>>, %arg8: memref<5x160x32xf32, #tpu.memory_space<vmem>>, %arg9: memref<1x32xf32, #tpu.memory_space<vmem>>, %arg10: memref<32x10xf32, #tpu.memory_space<vmem>>, %arg11: memref<1x10xf32, #tpu.memory_space<vmem>>, %arg12: memref<1x1x10xf32, #tpu.memory_space<vmem>>) attributes {dimension_semantics = [#tpu.dimension_semantics<parallel>], iteration_bounds = array<i64: 2>, scalar_prefetch = 0 : i64, scratch_operands = 0 : i64, tpu.core_type = #tpu.core_type<tc>, window_params = [{transform_indices = @transform_0, window_bounds = array<i64: 1, 22, 64>}, {pipeline_mode = #tpu.pipeline_mode<synchronous>, transform_indices = @transform_1, window_bounds = array<i64: 5, 64, 144>}, {pipeline_mode = #tpu.pipeline_mode<synchronous>, transform_indices = @transform_2, window_bounds = array<i64: 1, 144>}, {pipeline_mode = #tpu.pipeline_mode<synchronous>, transform_indices = @transform_3, window_bounds = array<i64: 15, 17>}, {pipeline_mode = #tpu.pipeline_mode<synchronous>, transform_indices = @transform_4, window_bounds = array<i64: 5, 136, 176>}, {pipeline_mode = #tpu.pipeline_mode<synchronous>, transform_indices = @transform_5, window_bounds = array<i64: 1, 176>}, {pipeline_mode = #tpu.pipeline_mode<synchronous>, transform_indices = @transform_6, window_bounds = array<i64: 5, 10>}, {pipeline_mode = #tpu.pipeline_mode<synchronous>, transform_indices = @transform_7, window_bounds = array<i64: 5, 160, 32>}, {pipeline_mode = #tpu.pipeline_mode<synchronous>, transform_indices = @transform_8, window_bounds = array<i64: 1, 32>}, {pipeline_mode = #tpu.pipeline_mode<synchronous>, transform_indices = @transform_9, window_bounds = array<i64: 32, 10>}, {pipeline_mode = #tpu.pipeline_mode<synchronous>, transform_indices = @transform_10, window_bounds = array<i64: 1, 10>}, {transform_indices = @transform_11, window_bounds = array<i64: 1, 1, 10>}]} {
    %c0 = arith.constant 0 : index
    %c0_0 = arith.constant 0 : index
    %c0_1 = arith.constant 0 : index
    %0 = vector.load %arg1[%c0, %c0_0, %c0_1] : memref<1x22x64xf32, #tpu.memory_space<vmem>>, vector<1x22x64xf32>
    %1 = vector.shape_cast %0 : vector<1x22x64xf32> to vector<22x64xf32>
    %2 = vector.extract_strided_slice %1 {offsets = [0, 0], sizes = [18, 64], strides = [1, 1]} : vector<22x64xf32> to vector<18x64xf32>
    %c0_2 = arith.constant 0 : index
    %c0_3 = arith.constant 0 : index
    %c0_4 = arith.constant 0 : index
    %3 = vector.load %arg2[%c0_2, %c0_3, %c0_4] : memref<5x64x144xf32, #tpu.memory_space<vmem>>, vector<1x64x144xf32>
    %4 = vector.shape_cast %3 : vector<1x64x144xf32> to vector<64x144xf32>
    %cst = arith.constant dense<0.000000e+00> : vector<18x144xf32>
    %5 = tpu.matmul %2, %4, %cst {dimension_numbers = #tpu.dot_dimension_numbers<[1], [0], [0], [1], [0, 0, 1, 1], [], []>} : vector<18x64xf32>, vector<64x144xf32>, vector<18x144xf32> -> vector<18x144xf32>
    %6 = vector.extract_strided_slice %1 {offsets = [1, 0], sizes = [18, 64], strides = [1, 1]} : vector<22x64xf32> to vector<18x64xf32>
    %c1 = arith.constant 1 : index
    %c0_5 = arith.constant 0 : index
    %c0_6 = arith.constant 0 : index
    %7 = vector.load %arg2[%c1, %c0_5, %c0_6] : memref<5x64x144xf32, #tpu.memory_space<vmem>>, vector<1x64x144xf32>
    %8 = vector.shape_cast %7 : vector<1x64x144xf32> to vector<64x144xf32>
    %cst_7 = arith.constant dense<0.000000e+00> : vector<18x144xf32>
    %9 = tpu.matmul %6, %8, %cst_7 {dimension_numbers = #tpu.dot_dimension_numbers<[1], [0], [0], [1], [0, 0, 1, 1], [], []>} : vector<18x64xf32>, vector<64x144xf32>, vector<18x144xf32> -> vector<18x144xf32>
    %10 = arith.addf %5, %9 : vector<18x144xf32>
    %11 = vector.extract_strided_slice %1 {offsets = [2, 0], sizes = [18, 64], strides = [1, 1]} : vector<22x64xf32> to vector<18x64xf32>
    %c2 = arith.constant 2 : index
    %c0_8 = arith.constant 0 : index
    %c0_9 = arith.constant 0 : index
    %12 = vector.load %arg2[%c2, %c0_8, %c0_9] : memref<5x64x144xf32, #tpu.memory_space<vmem>>, vector<1x64x144xf32>
    %13 = vector.shape_cast %12 : vector<1x64x144xf32> to vector<64x144xf32>
    %cst_10 = arith.constant dense<0.000000e+00> : vector<18x144xf32>
    %14 = tpu.matmul %11, %13, %cst_10 {dimension_numbers = #tpu.dot_dimension_numbers<[1], [0], [0], [1], [0, 0, 1, 1], [], []>} : vector<18x64xf32>, vector<64x144xf32>, vector<18x144xf32> -> vector<18x144xf32>
    %15 = arith.addf %10, %14 : vector<18x144xf32>
    %16 = vector.extract_strided_slice %1 {offsets = [3, 0], sizes = [18, 64], strides = [1, 1]} : vector<22x64xf32> to vector<18x64xf32>
    %c3 = arith.constant 3 : index
    %c0_11 = arith.constant 0 : index
    %c0_12 = arith.constant 0 : index
    %17 = vector.load %arg2[%c3, %c0_11, %c0_12] : memref<5x64x144xf32, #tpu.memory_space<vmem>>, vector<1x64x144xf32>
    %18 = vector.shape_cast %17 : vector<1x64x144xf32> to vector<64x144xf32>
    %cst_13 = arith.constant dense<0.000000e+00> : vector<18x144xf32>
    %19 = tpu.matmul %16, %18, %cst_13 {dimension_numbers = #tpu.dot_dimension_numbers<[1], [0], [0], [1], [0, 0, 1, 1], [], []>} : vector<18x64xf32>, vector<64x144xf32>, vector<18x144xf32> -> vector<18x144xf32>
    %20 = arith.addf %15, %19 : vector<18x144xf32>
    %21 = vector.extract_strided_slice %1 {offsets = [4, 0], sizes = [18, 64], strides = [1, 1]} : vector<22x64xf32> to vector<18x64xf32>
    %c4 = arith.constant 4 : index
    %c0_14 = arith.constant 0 : index
    %c0_15 = arith.constant 0 : index
    %22 = vector.load %arg2[%c4, %c0_14, %c0_15] : memref<5x64x144xf32, #tpu.memory_space<vmem>>, vector<1x64x144xf32>
    %23 = vector.shape_cast %22 : vector<1x64x144xf32> to vector<64x144xf32>
    %cst_16 = arith.constant dense<0.000000e+00> : vector<18x144xf32>
    %24 = tpu.matmul %21, %23, %cst_16 {dimension_numbers = #tpu.dot_dimension_numbers<[1], [0], [0], [1], [0, 0, 1, 1], [], []>} : vector<18x64xf32>, vector<64x144xf32>, vector<18x144xf32> -> vector<18x144xf32>
    %25 = arith.addf %20, %24 : vector<18x144xf32>
    %c0_17 = arith.constant 0 : index
    %c0_18 = arith.constant 0 : index
    %26 = vector.load %arg3[%c0_17, %c0_18] : memref<1x144xf32, #tpu.memory_space<vmem>>, vector<1x144xf32>
    %27 = vector.broadcast %26 : vector<1x144xf32> to vector<18x144xf32>
    %28 = arith.addf %25, %27 : vector<18x144xf32>
    %cst_19 = arith.constant 0.000000e+00 : f32
    %29 = vector.broadcast %cst_19 : f32 to vector<18x144xf32>
    %30 = arith.maximumf %28, %29 : vector<18x144xf32>
    %31 = vector.extract_strided_slice %30 {offsets = [0, 0], sizes = [17, 144], strides = [1, 1]} : vector<18x144xf32> to vector<17x144xf32>
    %32 = vector.extract_strided_slice %30 {offsets = [1, 0], sizes = [17, 144], strides = [1, 1]} : vector<18x144xf32> to vector<17x144xf32>
    %33 = arith.maximumf %31, %32 : vector<17x144xf32>
    %c0_20 = arith.constant 0 : index
    %c0_21 = arith.constant 0 : index
    %34 = vector.load %arg4[%c0_20, %c0_21] : memref<15x17xf32, #tpu.memory_space<vmem>>, vector<15x17xf32>
    %cst_22 = arith.constant dense<0.000000e+00> : vector<15x144xf32>
    %35 = tpu.matmul %34, %33, %cst_22 {dimension_numbers = #tpu.dot_dimension_numbers<[1], [0], [0], [1], [0, 0, 1, 1], [], []>} : vector<15x17xf32>, vector<17x144xf32>, vector<15x144xf32> -> vector<15x144xf32>
    %36 = vector.extract_strided_slice %35 {offsets = [0, 0], sizes = [15, 136], strides = [1, 1]} : vector<15x144xf32> to vector<15x136xf32>
    %37 = vector.extract_strided_slice %35 {offsets = [0, 8], sizes = [15, 136], strides = [1, 1]} : vector<15x144xf32> to vector<15x136xf32>
    %38 = arith.maximumf %36, %37 : vector<15x136xf32>
    %39 = vector.extract_strided_slice %38 {offsets = [0, 0], sizes = [11, 136], strides = [1, 1]} : vector<15x136xf32> to vector<11x136xf32>
    %c0_23 = arith.constant 0 : index
    %c0_24 = arith.constant 0 : index
    %c0_25 = arith.constant 0 : index
    %40 = vector.load %arg5[%c0_23, %c0_24, %c0_25] : memref<5x136x176xf32, #tpu.memory_space<vmem>>, vector<1x136x176xf32>
    %41 = vector.shape_cast %40 : vector<1x136x176xf32> to vector<136x176xf32>
    %cst_26 = arith.constant dense<0.000000e+00> : vector<11x176xf32>
    %42 = tpu.matmul %39, %41, %cst_26 {dimension_numbers = #tpu.dot_dimension_numbers<[1], [0], [0], [1], [0, 0, 1, 1], [], []>} : vector<11x136xf32>, vector<136x176xf32>, vector<11x176xf32> -> vector<11x176xf32>
    %43 = vector.extract_strided_slice %38 {offsets = [1, 0], sizes = [11, 136], strides = [1, 1]} : vector<15x136xf32> to vector<11x136xf32>
    %c1_27 = arith.constant 1 : index
    %c0_28 = arith.constant 0 : index
    %c0_29 = arith.constant 0 : index
    %44 = vector.load %arg5[%c1_27, %c0_28, %c0_29] : memref<5x136x176xf32, #tpu.memory_space<vmem>>, vector<1x136x176xf32>
    %45 = vector.shape_cast %44 : vector<1x136x176xf32> to vector<136x176xf32>
    %cst_30 = arith.constant dense<0.000000e+00> : vector<11x176xf32>
    %46 = tpu.matmul %43, %45, %cst_30 {dimension_numbers = #tpu.dot_dimension_numbers<[1], [0], [0], [1], [0, 0, 1, 1], [], []>} : vector<11x136xf32>, vector<136x176xf32>, vector<11x176xf32> -> vector<11x176xf32>
    %47 = arith.addf %42, %46 : vector<11x176xf32>
    %48 = vector.extract_strided_slice %38 {offsets = [2, 0], sizes = [11, 136], strides = [1, 1]} : vector<15x136xf32> to vector<11x136xf32>
    %c2_31 = arith.constant 2 : index
    %c0_32 = arith.constant 0 : index
    %c0_33 = arith.constant 0 : index
    %49 = vector.load %arg5[%c2_31, %c0_32, %c0_33] : memref<5x136x176xf32, #tpu.memory_space<vmem>>, vector<1x136x176xf32>
    %50 = vector.shape_cast %49 : vector<1x136x176xf32> to vector<136x176xf32>
    %cst_34 = arith.constant dense<0.000000e+00> : vector<11x176xf32>
    %51 = tpu.matmul %48, %50, %cst_34 {dimension_numbers = #tpu.dot_dimension_numbers<[1], [0], [0], [1], [0, 0, 1, 1], [], []>} : vector<11x136xf32>, vector<136x176xf32>, vector<11x176xf32> -> vector<11x176xf32>
    %52 = arith.addf %47, %51 : vector<11x176xf32>
    %53 = vector.extract_strided_slice %38 {offsets = [3, 0], sizes = [11, 136], strides = [1, 1]} : vector<15x136xf32> to vector<11x136xf32>
    %c3_35 = arith.constant 3 : index
    %c0_36 = arith.constant 0 : index
    %c0_37 = arith.constant 0 : index
    %54 = vector.load %arg5[%c3_35, %c0_36, %c0_37] : memref<5x136x176xf32, #tpu.memory_space<vmem>>, vector<1x136x176xf32>
    %55 = vector.shape_cast %54 : vector<1x136x176xf32> to vector<136x176xf32>
    %cst_38 = arith.constant dense<0.000000e+00> : vector<11x176xf32>
    %56 = tpu.matmul %53, %55, %cst_38 {dimension_numbers = #tpu.dot_dimension_numbers<[1], [0], [0], [1], [0, 0, 1, 1], [], []>} : vector<11x136xf32>, vector<136x176xf32>, vector<11x176xf32> -> vector<11x176xf32>
    %57 = arith.addf %52, %56 : vector<11x176xf32>
    %58 = vector.extract_strided_slice %38 {offsets = [4, 0], sizes = [11, 136], strides = [1, 1]} : vector<15x136xf32> to vector<11x136xf32>
    %c4_39 = arith.constant 4 : index
    %c0_40 = arith.constant 0 : index
    %c0_41 = arith.constant 0 : index
    %59 = vector.load %arg5[%c4_39, %c0_40, %c0_41] : memref<5x136x176xf32, #tpu.memory_space<vmem>>, vector<1x136x176xf32>
    %60 = vector.shape_cast %59 : vector<1x136x176xf32> to vector<136x176xf32>
    %cst_42 = arith.constant dense<0.000000e+00> : vector<11x176xf32>
    %61 = tpu.matmul %58, %60, %cst_42 {dimension_numbers = #tpu.dot_dimension_numbers<[1], [0], [0], [1], [0, 0, 1, 1], [], []>} : vector<11x136xf32>, vector<136x176xf32>, vector<11x176xf32> -> vector<11x176xf32>
    %62 = arith.addf %57, %61 : vector<11x176xf32>
    %c0_43 = arith.constant 0 : index
    %c0_44 = arith.constant 0 : index
    %63 = vector.load %arg6[%c0_43, %c0_44] : memref<1x176xf32, #tpu.memory_space<vmem>>, vector<1x176xf32>
    %64 = vector.broadcast %63 : vector<1x176xf32> to vector<11x176xf32>
    %65 = arith.addf %62, %64 : vector<11x176xf32>
    %cst_45 = arith.constant 0.000000e+00 : f32
    %66 = vector.broadcast %cst_45 : f32 to vector<11x176xf32>
    %67 = arith.maximumf %65, %66 : vector<11x176xf32>
    %68 = vector.extract_strided_slice %67 {offsets = [0, 0], sizes = [10, 176], strides = [1, 1]} : vector<11x176xf32> to vector<10x176xf32>
    %69 = vector.extract_strided_slice %67 {offsets = [1, 0], sizes = [10, 176], strides = [1, 1]} : vector<11x176xf32> to vector<10x176xf32>
    %70 = arith.maximumf %68, %69 : vector<10x176xf32>
    %c0_46 = arith.constant 0 : index
    %c0_47 = arith.constant 0 : index
    %71 = vector.load %arg7[%c0_46, %c0_47] : memref<5x10xf32, #tpu.memory_space<vmem>>, vector<5x10xf32>
    %cst_48 = arith.constant dense<0.000000e+00> : vector<5x176xf32>
    %72 = tpu.matmul %71, %70, %cst_48 {dimension_numbers = #tpu.dot_dimension_numbers<[1], [0], [0], [1], [0, 0, 1, 1], [], []>} : vector<5x10xf32>, vector<10x176xf32>, vector<5x176xf32> -> vector<5x176xf32>
    %73 = vector.extract_strided_slice %72 {offsets = [0, 0], sizes = [5, 160], strides = [1, 1]} : vector<5x176xf32> to vector<5x160xf32>
    %74 = vector.extract_strided_slice %72 {offsets = [0, 16], sizes = [5, 160], strides = [1, 1]} : vector<5x176xf32> to vector<5x160xf32>
    %75 = arith.maximumf %73, %74 : vector<5x160xf32>
    %c0_49 = arith.constant 0 : index
    %c0_50 = arith.constant 0 : index
    %76 = vector.load %arg9[%c0_49, %c0_50] : memref<1x32xf32, #tpu.memory_space<vmem>>, vector<1x32xf32>
    %77 = vector.extract_strided_slice %75 {offsets = [0, 0], sizes = [1, 160], strides = [1, 1]} : vector<5x160xf32> to vector<1x160xf32>
    %c0_51 = arith.constant 0 : index
    %c0_52 = arith.constant 0 : index
    %c0_53 = arith.constant 0 : index
    %78 = vector.load %arg8[%c0_51, %c0_52, %c0_53] : memref<5x160x32xf32, #tpu.memory_space<vmem>>, vector<1x160x32xf32>
    %79 = vector.shape_cast %78 : vector<1x160x32xf32> to vector<160x32xf32>
    %cst_54 = arith.constant dense<0.000000e+00> : vector<1x32xf32>
    %80 = tpu.matmul %77, %79, %cst_54 {dimension_numbers = #tpu.dot_dimension_numbers<[1], [0], [0], [1], [0, 0, 1, 1], [], []>} : vector<1x160xf32>, vector<160x32xf32>, vector<1x32xf32> -> vector<1x32xf32>
    %81 = arith.addf %76, %80 : vector<1x32xf32>
    %82 = vector.extract_strided_slice %75 {offsets = [1, 0], sizes = [1, 160], strides = [1, 1]} : vector<5x160xf32> to vector<1x160xf32>
    %c1_55 = arith.constant 1 : index
    %c0_56 = arith.constant 0 : index
    %c0_57 = arith.constant 0 : index
    %83 = vector.load %arg8[%c1_55, %c0_56, %c0_57] : memref<5x160x32xf32, #tpu.memory_space<vmem>>, vector<1x160x32xf32>
    %84 = vector.shape_cast %83 : vector<1x160x32xf32> to vector<160x32xf32>
    %cst_58 = arith.constant dense<0.000000e+00> : vector<1x32xf32>
    %85 = tpu.matmul %82, %84, %cst_58 {dimension_numbers = #tpu.dot_dimension_numbers<[1], [0], [0], [1], [0, 0, 1, 1], [], []>} : vector<1x160xf32>, vector<160x32xf32>, vector<1x32xf32> -> vector<1x32xf32>
    %86 = arith.addf %81, %85 : vector<1x32xf32>
    %87 = vector.extract_strided_slice %75 {offsets = [2, 0], sizes = [1, 160], strides = [1, 1]} : vector<5x160xf32> to vector<1x160xf32>
    %c2_59 = arith.constant 2 : index
    %c0_60 = arith.constant 0 : index
    %c0_61 = arith.constant 0 : index
    %88 = vector.load %arg8[%c2_59, %c0_60, %c0_61] : memref<5x160x32xf32, #tpu.memory_space<vmem>>, vector<1x160x32xf32>
    %89 = vector.shape_cast %88 : vector<1x160x32xf32> to vector<160x32xf32>
    %cst_62 = arith.constant dense<0.000000e+00> : vector<1x32xf32>
    %90 = tpu.matmul %87, %89, %cst_62 {dimension_numbers = #tpu.dot_dimension_numbers<[1], [0], [0], [1], [0, 0, 1, 1], [], []>} : vector<1x160xf32>, vector<160x32xf32>, vector<1x32xf32> -> vector<1x32xf32>
    %91 = arith.addf %86, %90 : vector<1x32xf32>
    %92 = vector.extract_strided_slice %75 {offsets = [3, 0], sizes = [1, 160], strides = [1, 1]} : vector<5x160xf32> to vector<1x160xf32>
    %c3_63 = arith.constant 3 : index
    %c0_64 = arith.constant 0 : index
    %c0_65 = arith.constant 0 : index
    %93 = vector.load %arg8[%c3_63, %c0_64, %c0_65] : memref<5x160x32xf32, #tpu.memory_space<vmem>>, vector<1x160x32xf32>
    %94 = vector.shape_cast %93 : vector<1x160x32xf32> to vector<160x32xf32>
    %cst_66 = arith.constant dense<0.000000e+00> : vector<1x32xf32>
    %95 = tpu.matmul %92, %94, %cst_66 {dimension_numbers = #tpu.dot_dimension_numbers<[1], [0], [0], [1], [0, 0, 1, 1], [], []>} : vector<1x160xf32>, vector<160x32xf32>, vector<1x32xf32> -> vector<1x32xf32>
    %96 = arith.addf %91, %95 : vector<1x32xf32>
    %97 = vector.extract_strided_slice %75 {offsets = [4, 0], sizes = [1, 160], strides = [1, 1]} : vector<5x160xf32> to vector<1x160xf32>
    %c4_67 = arith.constant 4 : index
    %c0_68 = arith.constant 0 : index
    %c0_69 = arith.constant 0 : index
    %98 = vector.load %arg8[%c4_67, %c0_68, %c0_69] : memref<5x160x32xf32, #tpu.memory_space<vmem>>, vector<1x160x32xf32>
    %99 = vector.shape_cast %98 : vector<1x160x32xf32> to vector<160x32xf32>
    %cst_70 = arith.constant dense<0.000000e+00> : vector<1x32xf32>
    %100 = tpu.matmul %97, %99, %cst_70 {dimension_numbers = #tpu.dot_dimension_numbers<[1], [0], [0], [1], [0, 0, 1, 1], [], []>} : vector<1x160xf32>, vector<160x32xf32>, vector<1x32xf32> -> vector<1x32xf32>
    %101 = arith.addf %96, %100 : vector<1x32xf32>
    %cst_71 = arith.constant 0.000000e+00 : f32
    %102 = vector.broadcast %cst_71 : f32 to vector<1x32xf32>
    %103 = arith.maximumf %101, %102 : vector<1x32xf32>
    %c0_72 = arith.constant 0 : index
    %c0_73 = arith.constant 0 : index
    %104 = vector.load %arg10[%c0_72, %c0_73] : memref<32x10xf32, #tpu.memory_space<vmem>>, vector<32x10xf32>
    %cst_74 = arith.constant dense<0.000000e+00> : vector<1x10xf32>
    %105 = tpu.matmul %103, %104, %cst_74 {dimension_numbers = #tpu.dot_dimension_numbers<[1], [0], [0], [1], [0, 0, 1, 1], [], []>} : vector<1x32xf32>, vector<32x10xf32>, vector<1x10xf32> -> vector<1x10xf32>
    %c0_75 = arith.constant 0 : index
    %c0_76 = arith.constant 0 : index
    %106 = vector.load %arg11[%c0_75, %c0_76] : memref<1x10xf32, #tpu.memory_space<vmem>>, vector<1x10xf32>
    %107 = arith.addf %105, %106 : vector<1x10xf32>
    %cst_77 = arith.constant 0.000000e+00 : f32
    %108 = vector.broadcast %cst_77 : f32 to vector<1x10xf32>
    %109 = arith.maximumf %107, %108 : vector<1x10xf32>
    %c0_78 = arith.constant 0 : index
    %c0_79 = arith.constant 0 : index
    %c0_80 = arith.constant 0 : index
    %110 = vector.load %arg12[%c0_78, %c0_79, %c0_80] : memref<1x1x10xf32, #tpu.memory_space<vmem>>, vector<1x1x10xf32>
    %111 = vector.shape_cast %110 : vector<1x1x10xf32> to vector<1x10xf32>
    %112 = vector.shape_cast %109 : vector<1x10xf32> to vector<1x1x10xf32>
    tpu.vector_store %arg12[%c0_78, %c0_79, %c0_80], %112 {strides = array<i32>} : memref<1x1x10xf32, #tpu.memory_space<vmem>>, vector<1x1x10xf32>,
    return
  }
  func.func @transform_0(%arg0: i32) -> (i32, i32, i32) {
    %c0_i32 = arith.constant 0 : i32
    %c0_i32_0 = arith.constant 0 : i32
    %c0_i32_1 = arith.constant 0 : i32
    return %arg0, %c0_i32, %c0_i32_0 : i32, i32, i32
  }
  func.func @transform_1(%arg0: i32) -> (i32, i32, i32) {
    %c0_i32 = arith.constant 0 : i32
    %c0_i32_0 = arith.constant 0 : i32
    %c0_i32_1 = arith.constant 0 : i32
    %c0_i32_2 = arith.constant 0 : i32
    return %c0_i32, %c0_i32_0, %c0_i32_1 : i32, i32, i32
  }
  func.func @transform_2(%arg0: i32) -> (i32, i32) {
    %c0_i32 = arith.constant 0 : i32
    %c0_i32_0 = arith.constant 0 : i32
    %c0_i32_1 = arith.constant 0 : i32
    return %c0_i32, %c0_i32_0 : i32, i32
  }
  func.func @transform_3(%arg0: i32) -> (i32, i32) {
    %c0_i32 = arith.constant 0 : i32
    %c0_i32_0 = arith.constant 0 : i32
    %c0_i32_1 = arith.constant 0 : i32
    return %c0_i32, %c0_i32_0 : i32, i32
  }
  func.func @transform_4(%arg0: i32) -> (i32, i32, i32) {
    %c0_i32 = arith.constant 0 : i32
    %c0_i32_0 = arith.constant 0 : i32
    %c0_i32_1 = arith.constant 0 : i32
    %c0_i32_2 = arith.constant 0 : i32
    return %c0_i32, %c0_i32_0, %c0_i32_1 : i32, i32, i32
  }
  func.func @transform_5(%arg0: i32) -> (i32, i32) {
    %c0_i32 = arith.constant 0 : i32
    %c0_i32_0 = arith.constant 0 : i32
    %c0_i32_1 = arith.constant 0 : i32
    return %c0_i32, %c0_i32_0 : i32, i32
  }
  func.func @transform_6(%arg0: i32) -> (i32, i32) {
    %c0_i32 = arith.constant 0 : i32
    %c0_i32_0 = arith.constant 0 : i32
    %c0_i32_1 = arith.constant 0 : i32
    return %c0_i32, %c0_i32_0 : i32, i32
  }
  func.func @transform_7(%arg0: i32) -> (i32, i32, i32) {
    %c0_i32 = arith.constant 0 : i32
    %c0_i32_0 = arith.constant 0 : i32
    %c0_i32_1 = arith.constant 0 : i32
    %c0_i32_2 = arith.constant 0 : i32
    return %c0_i32, %c0_i32_0, %c0_i32_1 : i32, i32, i32
  }
  func.func @transform_8(%arg0: i32) -> (i32, i32) {
    %c0_i32 = arith.constant 0 : i32
    %c0_i32_0 = arith.constant 0 : i32
    %c0_i32_1 = arith.constant 0 : i32
    return %c0_i32, %c0_i32_0 : i32, i32
  }
  func.func @transform_9(%arg0: i32) -> (i32, i32) {
    %c0_i32 = arith.constant 0 : i32
    %c0_i32_0 = arith.constant 0 : i32
    %c0_i32_1 = arith.constant 0 : i32
    return %c0_i32, %c0_i32_0 : i32, i32
  }
  func.func @transform_10(%arg0: i32) -> (i32, i32) {
    %c0_i32 = arith.constant 0 : i32
    %c0_i32_0 = arith.constant 0 : i32
    %c0_i32_1 = arith.constant 0 : i32
    return %c0_i32, %c0_i32_0 : i32, i32
  }
  func.func @transform_11(%arg0: i32) -> (i32, i32, i32) {
    %c0_i32 = arith.constant 0 : i32
    %c0_i32_0 = arith.constant 0 : i32
    %c0_i32_1 = arith.constant 0 : i32
    return %arg0, %c0_i32, %c0_i32_0 : i32, i32, i32
  }
}

</mosaic_0001>

<bundles_post_ra>
// kernel: cnn_forward.1
= control target key start
LH: loop header
LB: loop body
LE: loop exit
PB: predicated region body
PF: predicated region fallthrough
CT: control target
= control target key end

     0   :  { %s4581_s0 = inlined_call_operand.vmem [shape: f32[2,22,64], index: 0, kind: input, shape index: {}]   ;;  %s4582_s1 = inlined_call_operand.hbm [shape: f32[5,64,144], index: 1, kind: input, shape index: {}]   ;;  %s4583_s2 = inlined_call_operand.hbm [shape: f32[1,144], index: 2, kind: input, shape index: {}]   ;;  %s4584_s3 = inlined_call_operand.hbm [shape: f32[15,17], index: 3, kind: input, shape index: {}]   ;;  %s4585_s4 = inlined_call_operand.vmem [shape: f32[5,136,176], index: 4, kind: input, shape index: {}]   ;;  %s4586_s5 = inlined_call_operand.hbm [shape: f32[1,176], index: 5, kind: input, shape index: {}]   ;;  %s4587_s6 = inlined_call_operand.hbm [shape: f32[5,10], index: 6, kind: input, shape index: {}]   ;;  %s4588_s7 = inlined_call_operand.vmem [shape: f32[5,160,32], index: 7, kind: input, shape index: {}]   ;;  %s4589_s8 = inlined_call_operand.vmem [shape: f32[1,32], index: 8, kind: input, shape index: {}]   ;;  %s4590_s9 = inlined_call_operand.vmem [shape: f32[32,10], index: 9, kind: input, shape index: {}]   ;;  %s4591_s10 = inlined_call_operand.vmem [shape: f32[1,10], index: 10, kind: input, shape index: {}]   ;;  %s4592_s11 = inlined_call_operand.hbm [shape: f32[2,1,10], index: 11, kind: output, shape index: {}]  }
   0x1   :  { %4596 = sst [smem:[#allocation17_spill]] %s4583_s2 }
   0x2   :  { %4597 = sst [smem:[#allocation18_spill]] %s4586_s5 }
   0x3   :  { %16 = vsyncpa [#allocation3], 0 }
   0x4   :  { %17 = vsyncpa [#allocation6], 0 }
   0x5   :  { %18 = vsyncpa [#allocation9], 0 }
   0x6   :  { %19 = vsyncpa [#allocation4], 0 }
   0x7   :  { %21 = vsyncpa [#allocation4 + $0x1], 0  ;;  %s3313_s17 = smov 0   ;;  %s3315_s18 = smov 0  }
   0x8   :  { %s3317_s19 = smov 0   ;;  %s3319_s20 = smov 0  }
   0x9 LB: > { %s3334_s21 = sadd.s32 4294967295, %s3237_s20   ;;  %s2643_s22 = sadd.s32 4294967294, %s3237_s20   ;;  %s3237_s20 = sphi %s3319_s20, %s4619_s20   ;;  %s3233_s19 = sphi %s3317_s19, %s4618_s19   ;;  %s3229_s18 = sphi %s3315_s18, %s4617_s18   ;;  %s3225_s17 = sphi %s3313_s17, %s4616_s17  }
   0xa   : > { %s3338_s23 = sadd.s32 1, %s3237_s20   ;;  %s270_s24 = sadd.s32 1, %s3233_s19 }
   0xb   : > { %s267_s25 = ssub.s32 %s3237_s20, %s3338_s23  ;;  %p280_p0 = scmp.ne.s32.totalorder %s3233_s19, %s3229_s18 }
   0xc   : > { %p268_p1 = scmp.eq.s32.totalorder %s267_s25, 0  ;;  %p281_p2 = scmp.eq.s32.totalorder %s3334_s21, 1 }
   0xd   : > { %p286_p3 = scmp.ne.s32.totalorder %s3229_s18, %s3225_s17  ;;  %p287_p4 = scmp.eq.s32.totalorder %s2643_s22, 1 }
   0xe   : > { %s3349_s26 = scalar_select %p268_p1, %s3233_s19, %s270_s24  }
   0xf   : > { %p3351_p5 = por %p281_p2, %p280_p0  ;;  %p3355_p6 = por %p287_p4, %p286_p3 }
  0x10   : > { %4598 = sst [smem:[#allocation16_spill]] %s3349_s26  ;;  %p2644_p7 = scmp.ge.s32.totalorder %s3237_s20, 1 }
  0x11   : > { %s4599_s27 = scalar_select %p3351_p5, 1, 0 }
  0x12   : > { %s4600_s28 = scalar_select %p3355_p6, 1, 0 }
  0x13   : > { %p294_p8 = scmp.lt.s32.totalorder %s3237_s20, 3  ;;  %p4593_p9 = scmp.eq.s32.totalorder %s3334_s21, 0 }
  0x14   : > { %s3239_s30 = smov [#allocation5]   ;;  %s3240_s13 = smov [#allocation8]  }
  0x15   : > { %p3362_p10 = pnand %p2644_p7, %p294_p8  ;;  %s320_s12 = sshll.u32 %s3239_s30, 4  ;;  %s321_s12 = int_to_ptr.vmem [resolvable:$true] %s320_s12 }
  0x16   : > { %s347_s14 = sshll.u32 %s3240_s13, 4  ;;  %s3241_s16 = smov [#allocation2]   ;;  %s348_s14 = int_to_ptr.vmem [resolvable:$true] %s347_s14 }
  0x17   : > { %s4601_s29 = scalar_select %p3362_p10, 1, 0 }
  0x18   : > { %p2954_p11 = pneg %p3362_p10  ;;  %s306_s22 = sshll.u32 %s3241_s16, 4  ;;  %s3374_s22 = int_to_ptr.vmem [resolvable:$true] %s306_s22 }
  0x19   : > { %s3046_s25 = scalar_lea.vmem %s321_s12, 32  ;;  %p3054_p3 = scmp.lt.s32.totalorder %s321_s12, %s321_s12 }
  0x1a   : > { %p3370_p12 = pnand %p4593_p9, %p2954_p11  ;;  %p3047_p0 = scmp.ne.s32.totalorder %s321_s12, %s3046_s25 }
  0x1b   : > { %p3055_p4 = scmp.lt.s32.totalorder %s3046_s25, %s3046_s25 }
  0x1c   : > { %p3378_p13 = pneg %p3370_p12 }
  0x1d   : > { %p3056_p7 = por %p3055_p4, %p3054_p3 }
  0x1e   : > { %p3049_p1 = pnand %p3047_p0, %p3378_p13 }
  0x20   : > { %p3050_p2 = pneg %p3049_p1 }
  0x22   : > { %p3057_p8 = pnand %p3056_p7, %p3050_p2 }
  0x24   : > { %3060 = shalt.err (!%p3057_p8)
}
  0x25   : > { %s4604_s2 = sld [smem:[#allocation17_spill]]  ;;  %s3072_s16 = scalar_lea.vmem %s348_s14, 32 }
  0x26   : > { %p3073_p11 = scmp.ne.s32.totalorder %s348_s14, %s3072_s16  ;;  %p3080_p5 = scmp.lt.s32.totalorder %s348_s14, %s348_s14 }
  0x27   : > { %p3081_p0 = scmp.lt.s32.totalorder %s3072_s16, %s3072_s16 }
  0x28   : > { %p3075_p9 = pnand %p3073_p11, %p3378_p13 }
  0x29   : > { %p3082_p1 = por %p3081_p0, %p3080_p5 }
  0x2a   : > { %p3076_p6 = pneg %p3075_p9 }
  0x2b   : > { %2960 = dma.hbm_to_vmem [thread:$0]  (!%p3370_p12), %s4604_s2, 32, %s321_s12, [#allocation6]  }
  0x2c   : > { %p3083_p10 = pnand %p3082_p1, %p3076_p6 }
  0x2e   : > { %3086 = shalt.err (!%p3083_p10)
}
  0x2f   : > { %s4605_s5 = sld [smem:[#allocation18_spill]]  ;;  %s3098_s12 = scalar_lea.vmem %s3374_s22, 10240 }
  0x30   : > { %p3099_p2 = scmp.ne.s32.totalorder %s3374_s22, %s3098_s12  ;;  %p3106_p4 = scmp.lt.s32.totalorder %s3374_s22, %s3374_s22 }
  0x31   : > { %p3107_p5 = scmp.lt.s32.totalorder %s3098_s12, %s3098_s12 }
  0x32   : > { %p3101_p3 = pnand %p3099_p2, %p3378_p13 }
  0x33   : > { %p3108_p6 = por %p3107_p5, %p3106_p4 }
  0x34   : > { %p3102_p9 = pneg %p3101_p3 }
  0x35   : > { %2966 = dma.hbm_to_vmem [thread:$0]  (!%p3370_p12), %s4605_s5, 32, %s348_s14, [#allocation9]  }
  0x36   : > { %p3109_p10 = pnand %p3108_p6, %p3102_p9 }
  0x38   : > { %3112 = shalt.err (!%p3109_p10)
}
  0x39   : > { %s3242_s30 = smov 256   ;;  %s3243_s26 = smov 16  }
  0x3a   : > { %2957 = dma.hbm_to_vmem [thread:$0]  (!%p3370_p12), %s4582_s1, 10240, %s3374_s22, [#allocation3], %s3242_s30, %s3242_s30, %s3243_s26  }
  0x3b   : > { %s3244_s14 = smov [#allocation7]  }
  0x3c   : > { %s330_s25 = sshll.u32 %s3244_s14, 4  ;;  %s331_s25 = int_to_ptr.vmem [resolvable:$true] %s330_s25 }
  0x3d   : > { %s3124_s2 = scalar_lea.vmem %s331_s25, 256  ;;  %p3132_p0 = scmp.lt.s32.totalorder %s331_s25, %s331_s25 }
  0x3e   : > { %p3125_p7 = scmp.ne.s32.totalorder %s331_s25, %s3124_s2  ;;  %p3133_p1 = scmp.lt.s32.totalorder %s3124_s2, %s3124_s2 }
  0x40   : > { %p3127_p8 = pnand %p3125_p7, %p3378_p13  ;;  %p3134_p2 = por %p3133_p1, %p3132_p0 }
  0x42   : > { %p3128_p11 = pneg %p3127_p8 }
  0x44   : > { %p3135_p3 = pnand %p3134_p2, %p3128_p11 }
  0x46   : > { %3138 = shalt.err (!%p3135_p3)
}
  0x47   : > { %s3245_s12 = smov 128   ;;  %s3246_s5 = smov 8  }
  0x48   : > { %2963 = dma.hbm_to_vmem [thread:$0]  (!%p3370_p12), %s4584_s3, 256, %s331_s25, [#allocation6], %s3245_s12, %s3245_s12, %s3246_s5  }
  0x49   : > { %s3247_s30 = smov [#allocation10]  }
  0x4a   : > { %s358_s26 = sshll.u32 %s3247_s30, 4  ;;  %s359_s26 = int_to_ptr.vmem [resolvable:$true] %s358_s26 }
  0x4b   : > { %s3150_s16 = scalar_lea.vmem %s359_s26, 128  ;;  %p3158_p6 = scmp.lt.s32.totalorder %s359_s26, %s359_s26 }
  0x4c   : > { %p3151_p9 = scmp.ne.s32.totalorder %s359_s26, %s3150_s16  ;;  %p3159_p10 = scmp.lt.s32.totalorder %s3150_s16, %s3150_s16 }
  0x4e   : > { %p3153_p4 = pnand %p3151_p9, %p3378_p13  ;;  %p3160_p7 = por %p3159_p10, %p3158_p6 }
  0x50   : > { %p3154_p5 = pneg %p3153_p4 }
  0x52   : > { %p3161_p8 = pnand %p3160_p7, %p3154_p5 }
  0x54   : > { %3164 = shalt.err (!%p3161_p8)
}
  0x55   : > { %2969 = dma.hbm_to_vmem [thread:$0]  (!%p3370_p12), %s4587_s6, 128, %s359_s26, [#allocation9]  }
  0x56   : > { %p4606_p11 = scmp.ne.s32.totalorder %s4601_s29, 0 }
  0x57   : > { %p4607_p0 = scmp.eq.s32.totalorder (!%p4606_p11), %s3334_s21, 0 }
  0x58   : > { %391 = sbr.rel (%p4606_p11) target bundleno = 1784 (0x6f8), region = 64 }
  0x5d   : > { %3208 = dma.done.wait (%p4607_p0), [#allocation3], 10240   ;;  %p4608_p13 = pmov %p4607_p0 }
  0x5e   : > { %p4609_p1 = pmov %p4607_p0 }
  0x5f   : > { %3210 = vsyncadd (%p4608_p13), [#allocation3], 4294957056 }
  0x60   : > { %3212 = dma.done.wait (%p4609_p1), [#allocation6], 288   ;;  %p4610_p2 = pmov %p4607_p0 }
  0x61   : > { %p4611_p3 = pmov %p4607_p0 }
  0x62   : > { %3214 = vsyncadd (%p4610_p2), [#allocation6], 4294967008 }
  0x63   : > { %3216 = dma.done.wait (%p4611_p3), [#allocation9], 160   ;;  %p4612_p12 = pmov %p4607_p0 }
  0x64   : > { %v3248_v0 = vmov 0.0   ;;  %p446_p9 = scmp.lt.s32.totalorder %s3334_s21, 1  ;;  %v486_v1 = vld [vmem:[#allocation2 + $0xf8] sm:$0xff]  ;;  %v485_v3 = vld [vmem:[#allocation2 + $0xf0] sm:$0xff]  ;;  %v484_v5 = vld [vmem:[#allocation2 + $0xe8] sm:$0xff]  ;;  %vm490_vm0 = vcmask 1046528  }
  0x65   : > { %3218 = vsyncadd (%p4612_p12), [#allocation9], 4294967136  ;;  %567 = vmatprep.mubr.f32.mxu0 %v3248_v0  ;;  %656 = vmatprep.mubr.f32.mxu1 %v3248_v0  ;;  %v469_v2 = vld [vmem:[#allocation2 + $0x78] sm:$0xff]  ;;  %v468_v4 = vld [vmem:[#allocation2 + $0x70] sm:$0xff]  ;;  %vm496_vm1 = vcmask 523264   ;;  %vm692_vm2 = vcmask 1045504  }
  0x66   : > { %s3440_s5 = scalar_select %p446_p9, %s3334_s21, 1  ;;  %519 = vmatprep.subr.mxu0 %v486_v1  ;;  %608 = vmatprep.subr.mxu1 %v469_v2  ;;  %v467_v6 = vld [vmem:[#allocation2 + $0x68] sm:$0xff]  ;;  %v483_v7 = vld [vmem:[#allocation2 + $0xe0] sm:$0xff]  ;;  %v482_v9 = vld [vmem:[#allocation2 + $0xd8] sm:$0xff]  ;;  %vm810_vm3 = vcmask 1044480   ;;  %vm928_vm4 = vcmask 1043456  }
  0x67   : > { %520 = vmatpush1.msra.mxu0 %v485_v3  ;;  %609 = vmatpush1.msra.mxu1 %v468_v4  ;;  %v466_v8 = vld [vmem:[#allocation2 + $0x60] sm:$0xff]  ;;  %v465_v10 = vld [vmem:[#allocation2 + $0x58] sm:$0xff]  ;;  %v481_v11 = vld [vmem:[#allocation2 + $0xd0] sm:$0xff]  ;;  %vm1090_vm5 = vcmask 1040384   ;;  %vm1083_vm6 = vcmask 138240   ;;  %s3249_s15 = smov 120  }
  0x68   : > { %521 = vmatprep.subr.mxu0 %v484_v5  ;;  %610 = vmatprep.subr.mxu1 %v467_v6  ;;  %v464_v12 = vld [vmem:[#allocation2 + $0x50] sm:$0xff]  ;;  %s2931_s29 = smul.u32 24, %s3440_s5  ;;  %v480_v13 = vld [vmem:[#allocation2 + $0xc8] sm:$0xff]  ;;  %v479_v15 = vld [vmem:[#allocation2 + $0xc0] sm:$0xff]  ;;  %vm1186_vm7 = vcmask 982016   ;;  %vm1278_vm8 = vcmask 64512  }
  0x69   : > { %522 = vmatpush1.msra.mxu0 %v483_v7  ;;  %611 = vmatpush1.msra.mxu1 %v466_v8  ;;  %v463_v14 = vld [vmem:[#allocation2 + $0x48] sm:$0xff]  ;;  %v462_v16 = vld [vmem:[#allocation2 + $0x40] sm:$0xff]  ;;  %v478_v17 = vld [vmem:[#allocation2 + $0xb8] sm:$0xff]  ;;  %vm1868_vm9 = vcmask 1041408   ;;  %vm1864_vm10 = vcmask 80896   ;;  %s3250_s16 = smov 112  }
  0x6a   : > { %523 = vmatprep.subr.mxu0 %v482_v9  ;;  %612 = vmatprep.subr.mxu1 %v465_v10  ;;  %v461_v18 = vld [vmem:[#allocation2 + $0x38] sm:$0xff]  ;;  %v477_v19 = vld [vmem:[#allocation2 + $0xb0] sm:$0xff]  ;;  %s3446_s25 = scalar_lea.vmem %s4581_s0, %s2931_s29  ;;  %v476_v21 = vld [vmem:[#allocation2 + $0xa8] sm:$0xff]  ;;  %vm1952_vm11 = vcmask 916480   ;;  %vm1979_vm12 = vcmask 261120   ;;  %vm3251_vm13 = vmmov 0  }
  0x6b   : > { %524 = vmatpush1.msra.mxu0 %v481_v11  ;;  %613 = vmatpush1.msra.mxu1 %v464_v12  ;;  %v460_v20 = vld [vmem:[#allocation2 + $0x30] sm:$0xff]  ;;  %v459_v22 = vld [vmem:[#allocation2 + $0x28] sm:$0xff]  ;;  %v475_v23 = vld [vmem:[#allocation2 + $0xa0] sm:$0xff]  ;;  %s444_s2 = sand.u32 1, %s3229_s18   ;;  %s2912_s29 = sshll.u32 %s3334_s21, 4  ;;  %vm2523_vm14 = vcmask 73728  }
  0x6c   : > { %525 = vmatprep.subr.mxu0 %v480_v13  ;;  %614 = vmatprep.subr.mxu1 %v463_v14  ;;  %v458_v24 = vld [vmem:[#allocation2 + $0x20] sm:$0xff]  ;;  %v474_v25 = vld [vmem:[#allocation2 + $0x98] sm:$0xff]  ;;  %v473_v28 = vld [vmem:[#allocation2 + $0x90] sm:$0xff]  ;;  %s2536_s13 = scalar_lea.hbm %s4592_s11, %s2912_s29  ;;  %s2526_s22 = scalar_lea.sflag [#allocation4], %s444_s2 }
  0x6d   : > { %526 = vmatpush1.msra.mxu0 %v479_v15  ;;  %615 = vmatpush1.msra.mxu1 %v462_v16  ;;  %v457_v26 = vld [vmem:[#allocation2 + $0x18] sm:$0xff]  ;;  %v3449_v27 = vld [vmem:[%s3446_s25] sm:$0xff]  ;;  %v456_v29 = vld [vmem:[#allocation2 + $0x10] sm:$0xff]  ;;  %p4613_p5 = scmp.ne.s32.totalorder %s4599_s27, 0  ;;  %s3252_s26 = smov [#allocation11]  }
  0x6e   : > { %527 = vmatprep.subr.mxu0 %v478_v17  ;;  %616 = vmatprep.subr.mxu1 %v461_v18  ;;  %v3452_v30 = vld [vmem:[%s3446_s25 + $0x8] sm:$0xff]  ;;  %v491_v31 = vrot.slane %v3449_v27, 1  ;;  %v471_v35 = vld [vmem:[#allocation2 + $0x80] sm:$0xff]  ;;  %v691_v38 = vld [vmem:[#allocation2 + $0x178] sm:$0xff]  ;;  %v693_v2 = vrot.slane %v3449_v27, 2  ;;  %v811_v9 = vrot.slane %v3449_v27, 3 }
  0x6f   : > { %528 = vmatpush1.msra.mxu0 %v477_v19  ;;  %617 = vmatpush1.msra.mxu1 %v460_v20  ;;  %v472_v32 = vld [vmem:[#allocation2 + $0x88] sm:$0xff]  ;;  %v492_v34 = vrot.slane %v3452_v30, 1  ;;  %v454_v36 = vld [vmem:[#allocation2] sm:$0xff]  ;;  %v809_v39 = vld [vmem:[#allocation2 + $0x1f8] sm:$0xff]  ;;  %v694_v3 = vrot.slane %v3452_v30, 2  ;;  %v812_v10 = vrot.slane %v3452_v30, 3 }
  0x70   : > { %529 = vmatprep.subr.mxu0 %v476_v21  ;;  %618 = vmatprep.subr.mxu1 %v459_v22  ;;  %v455_v33 = vld [vmem:[#allocation2 + $0x8] sm:$0xff]  ;;  %v3458_v40 = vld [vmem:[%s3446_s25 + $0x10] sm:$0x3f]  ;;  %v688_v45 = vld [vmem:[#allocation2 + $0x160] sm:$0xff]  ;;  %s3169_s21 = sshll.u32 %s3252_s26, 4  ;;  %s3170_s21 = int_to_ptr.vmem [resolvable:$false] %s3169_s21 }
  0x71   : > { %530 = vmatpush1.msra.mxu0 %v475_v23  ;;  %619 = vmatpush1.msra.mxu1 %v458_v24  ;;  %v493_v37 = vsel %vm490_vm0, %v491_v31, %v492_v34  ;;  %v690_v41 = vld [vmem:[#allocation2 + $0x170] sm:$0xff]  ;;  %v689_v43 = vld [vmem:[#allocation2 + $0x168] sm:$0xff]  ;;  %v806_v46 = vld [vmem:[#allocation2 + $0x1e0] sm:$0xff]  ;;  %v494_v47 = vrot.slane %v3458_v40, 1  ;;  %v695_v12 = vsel %vm692_vm2, %v693_v2, %v694_v3  ;;  %v696_v16 = vrot.slane %v3458_v40, 2 }
  0x72   : > { %531 = vmatprep.subr.mxu0 %v474_v25  ;;  %620 = vmatprep.subr.mxu1 %v457_v26  ;;  %v808_v42 = vld [vmem:[#allocation2 + $0x1f0] sm:$0xff]  ;;  %v807_v44 = vld [vmem:[#allocation2 + $0x1e8] sm:$0xff]  ;;  %v687_v48 = vld [vmem:[#allocation2 + $0x158] sm:$0xff]  ;;  %v813_v18 = vsel %vm810_vm3, %v811_v9, %v812_v10  ;;  %v814_v19 = vrot.slane %v3458_v40, 3 }
  0x73   : > { %532 = vmatpush1.msra.mxu0 %v473_v28  ;;  %621 = vmatpush1.msra.mxu1 %v456_v29  ;;  %v686_v49 = vld [vmem:[#allocation2 + $0x150] sm:$0xff]  ;;  %v685_v50 = vld [vmem:[#allocation2 + $0x148] sm:$0xff]  ;;  %v805_v51 = vld [vmem:[#allocation2 + $0x1d8] sm:$0xff]  ;;  %v495_v52 = vsel %vm490_vm0, %v492_v34, %v494_v47  ;;  %v697_v22 = vsel %vm692_vm2, %v694_v3, %v696_v16 }
  0x74   : > { %533 = vmatprep.subr.mxu0 %v472_v32  ;;  %622 = vmatprep.subr.mxu1 %v455_v33  ;;  %v684_v53 = vld [vmem:[#allocation2 + $0x140] sm:$0xff]  ;;  %v804_v54 = vld [vmem:[#allocation2 + $0x1d0] sm:$0xff]  ;;  %v683_v55 = vld [vmem:[#allocation2 + $0x138] sm:$0xff]  ;;  %v815_v25 = vsel %vm810_vm3, %v812_v10, %v814_v19 }
  0x75   : > { %534 = vmatpush1.msra.mxu0 %v471_v35  ;;  %623 = vmatpush1.msra.mxu1 %v454_v36  ;;  %v803_v56 = vld [vmem:[#allocation2 + $0x1c8] sm:$0xff]  ;;  %v682_v57 = vld [vmem:[#allocation2 + $0x130] sm:$0xff]  ;;  %v802_v58 = vld [vmem:[#allocation2 + $0x1c0] sm:$0xff]  ;;  %v929_v35 = vrot.slane %v3449_v27, 4  ;;  %v930_v36 = vrot.slane %v3452_v30, 4 }
  0x76   : > { %2658 = vmatmul.mubr.msk.f32.vlgmr.msra.gmra.mxu0 %vm496_vm1, %v493_v37  ;;  %2661 = vmatmul.mubr.msk.f32.vlgmr.msra.gmra.mxu1 %vm496_vm1, %v3449_v27  ;;  %v681_v59 = vld [vmem:[#allocation2 + $0x128] sm:$0xff]  ;;  %v801_v60 = vld [vmem:[#allocation2 + $0x1b8] sm:$0xff]  ;;  %v680_v61 = vld [vmem:[#allocation2 + $0x120] sm:$0xff] }
  0x77   : > { %720 = vmatprep.subr.mxu0 %v691_v38  ;;  %838 = vmatprep.subr.mxu1 %v809_v39  ;;  %v800_v62 = vld [vmem:[#allocation2 + $0x1b0] sm:$0xff]  ;;  %v679_v63 = vld [vmem:[#allocation2 + $0x118] sm:$0xff]  ;;  %v799_v1 = vld [vmem:[#allocation2 + $0x1a8] sm:$0xff] }
  0x78   : > { %721 = vmatpush1.msra.mxu0 %v690_v41  ;;  %839 = vmatpush1.msra.mxu1 %v808_v42  ;;  %v678_v4 = vld [vmem:[#allocation2 + $0x110] sm:$0xff]  ;;  %v798_v5 = vld [vmem:[#allocation2 + $0x1a0] sm:$0xff]  ;;  %v677_v6 = vld [vmem:[#allocation2 + $0x108] sm:$0xff]  ;;  %v931_v41 = vsel %vm928_vm4, %v929_v35, %v930_v36  ;;  %v932_v42 = vrot.slane %v3458_v40, 4 }
  0x79   : > { %722 = vmatprep.subr.mxu0 %v689_v43  ;;  %840 = vmatprep.subr.mxu1 %v807_v44  ;;  %v797_v7 = vld [vmem:[#allocation2 + $0x198] sm:$0xff]  ;;  %v676_v8 = vld [vmem:[#allocation2 + $0x100] sm:$0xff]  ;;  %v796_v11 = vld [vmem:[#allocation2 + $0x190] sm:$0xff] }
  0x7a   : > { %723 = vmatpush1.msra.mxu0 %v688_v45  ;;  %841 = vmatpush1.msra.mxu1 %v806_v46  ;;  %v795_v13 = vld [vmem:[#allocation2 + $0x188] sm:$0xff]  ;;  %v927_v14 = vld [vmem:[#allocation2 + $0x278] sm:$0xff]  ;;  %v794_v15 = vld [vmem:[#allocation2 + $0x180] sm:$0xff]  ;;  %v933_v27 = vsel %vm928_vm4, %v930_v36, %v932_v42 }
  0x7b   : > { %724 = vmatprep.subr.mxu0 %v687_v48  ;;  %573 = vmatprep.mubr.f32.mxu0 %v3248_v0  ;;  %v926_v17 = vld [vmem:[#allocation2 + $0x270] sm:$0xff]  ;;  %v925_v20 = vld [vmem:[#allocation2 + $0x268] sm:$0xff]  ;;  %v924_v21 = vld [vmem:[#allocation2 + $0x260] sm:$0xff] }
  0x7c   : > { %725 = vmatpush1.msra.mxu0 %v686_v49  ;;  %662 = vmatprep.mubr.f32.mxu1 %v3248_v0  ;;  %v923_v23 = vld [vmem:[#allocation2 + $0x258] sm:$0xff]  ;;  %v922_v24 = vld [vmem:[#allocation2 + $0x250] sm:$0xff]  ;;  %v921_v26 = vld [vmem:[#allocation2 + $0x248] sm:$0xff] }
  0x7d   : > { %726 = vmatprep.subr.mxu0 %v685_v50  ;;  %842 = vmatprep.subr.mxu1 %v805_v51  ;;  %v920_v28 = vld [vmem:[#allocation2 + $0x240] sm:$0xff]  ;;  %v919_v29 = vld [vmem:[#allocation2 + $0x238] sm:$0xff]  ;;  %v918_v31 = vld [vmem:[#allocation2 + $0x230] sm:$0xff] }
  0x7e   : > { %2659 = vmatmul.mubr.msk.f32.gmra.mxu0 %vm496_vm1, %v495_v52  ;;  %2662 = vmatmul.mubr.msk.f32.gmra.mxu1 %vm496_vm1, %v3452_v30  ;;  %v917_v32 = vld [vmem:[#allocation2 + $0x228] sm:$0xff]  ;;  %v916_v33 = vld [vmem:[#allocation2 + $0x220] sm:$0xff]  ;;  %v915_v34 = vld [vmem:[#allocation2 + $0x218] sm:$0xff] }
  0x7f   : > { %727 = vmatpush1.msra.mxu0 %v684_v53  ;;  %843 = vmatpush1.msra.mxu1 %v804_v54  ;;  %v914_v37 = vld [vmem:[#allocation2 + $0x210] sm:$0xff]  ;;  %v913_v38 = vld [vmem:[#allocation2 + $0x208] sm:$0xff]  ;;  %v912_v39 = vld [vmem:[#allocation2 + $0x200] sm:$0xff] }
  0x80   : > { %728 = vmatprep.subr.mxu0 %v683_v55  ;;  %844 = vmatprep.subr.mxu1 %v803_v56 }
  0x81   : > { %729 = vmatpush1.msra.mxu0 %v682_v57  ;;  %845 = vmatpush1.msra.mxu1 %v802_v58 }
  0x82   : > { %579 = vmatprep.mubr.f32.mxu0 %v3248_v0  ;;  %668 = vmatprep.mubr.f32.mxu1 %v3248_v0 }
  0x83   : > { %730 = vmatprep.subr.mxu0 %v681_v59  ;;  %846 = vmatprep.subr.mxu1 %v801_v60 }
  0x84   : > { %2660 = vmatmul.mubr.msk.f32.gmra.mxu0 %vm496_vm1, %v494_v47  ;;  %2663 = vmatmul.mubr.msk.f32.gmra.mxu1 %vm496_vm1, %v3458_v40 }
  0x85   : > { %731 = vmatpush1.msra.mxu0 %v680_v61  ;;  %847 = vmatpush1.msra.mxu1 %v800_v62  ;;  %v1031_v61 = vlaneseq }
  0x86   : > { %732 = vmatprep.subr.mxu0 %v679_v63  ;;  %848 = vmatprep.subr.mxu1 %v799_v1 }
  0x87   : > { %733 = vmatpush1.msra.mxu0 %v678_v4  ;;  %849 = vmatpush1.msra.mxu1 %v798_v5 }
  0x88   : > { %734 = vmatprep.subr.mxu0 %v677_v6  ;;  %850 = vmatprep.subr.mxu1 %v797_v7  ;;  %v3509_v6 = vshrl.u32 %v1031_v61, 7 }
  0x89   : > { %735 = vmatpush1.msra.mxu0 %v676_v8  ;;  %768 = vmatprep.mubr.f32.mxu0 %v3248_v0 }
  0x8a   : > { %851 = vmatpush1.msra.mxu1 %v796_v11  ;;  %2664 = vmatmul.mubr.msk.f32.vlgmr.msra.gmra.mxu0 %vm496_vm1, %v695_v12 }
  0x8b   : > { %852 = vmatprep.subr.mxu1 %v795_v13  ;;  %956 = vmatprep.subr.mxu0 %v927_v14  ;;  %v1037_v14 = vsub.s32 1, %v3509_v6 }
  0x8c   : > { %853 = vmatpush1.msra.mxu1 %v794_v15  ;;  %886 = vmatprep.mubr.f32.mxu1 %v3248_v0 }
  0x8d   : > { %957 = vmatpush1.msra.mxu0 %v926_v17  ;;  %2667 = vmatmul.mubr.msk.f32.vlgmr.msra.gmra.mxu1 %vm496_vm1, %v813_v18  ;;  %v1033_v18 = vsub.s32 0, %v3509_v6 }
  0x8e   : > { %958 = vmatprep.subr.mxu0 %v925_v20  ;;  %774 = vmatprep.mubr.f32.mxu0 %v3248_v0  ;;  %v1029_v20 = vld [vmem:[#allocation5] sm:$0x3] }
  0x8f   : > { %959 = vmatpush1.msra.mxu0 %v924_v21  ;;  %892 = vmatprep.mubr.f32.mxu1 %v3248_v0 }
  0x90   : > { %2665 = vmatmul.mubr.msk.f32.gmra.mxu0 %vm496_vm1, %v697_v22  ;;  %960 = vmatprep.subr.mxu0 %v923_v23 }
  0x91   : > { %961 = vmatpush1.msra.mxu0 %v922_v24  ;;  %2668 = vmatmul.mubr.msk.f32.gmra.mxu1 %vm496_vm1, %v815_v25 }
  0x92   : > { %962 = vmatprep.subr.mxu0 %v921_v26  ;;  %780 = vmatprep.mubr.f32.mxu0 %v3248_v0 }
  0x93   : > { %963 = vmatpush1.msra.mxu0 %v920_v28  ;;  %898 = vmatprep.mubr.f32.mxu1 %v3248_v0 }
  0x94   : > { %2666 = vmatmul.mubr.msk.f32.gmra.mxu0 %vm496_vm1, %v696_v16  ;;  %964 = vmatprep.subr.mxu0 %v919_v29  ;;  %v1038_v29 = vrot.slane %v1029_v20, %v1037_v14 }
  0x95   : > { %965 = vmatpush1.msra.mxu0 %v918_v31  ;;  %2669 = vmatmul.mubr.msk.f32.gmra.mxu1 %vm496_vm1, %v814_v19 }
  0x96   : > { %966 = vmatprep.subr.mxu0 %v917_v32  ;;  %1004 = vmatprep.mubr.f32.mxu0 %v3248_v0 }
  0x97   : > { %967 = vmatpush1.msra.mxu0 %v916_v33  ;;  %1161 = vmatprep.mubr.f32.mxu1 %v3248_v0 }
  0x98   : > { %968 = vmatprep.subr.mxu0 %v915_v34  ;;  %v1034_v34 = vrot.slane %v1029_v20, %v1033_v18  ;;  %v1222_v20 = vld [vmem:[%s4585_s4 + $0xc8] sm:$0xff] }
  0x99   : > { %969 = vmatpush1.msra.mxu0 %v914_v37 }
  0x9a   : > { %970 = vmatprep.subr.mxu0 %v913_v38 }
  0x9b   : > { %971 = vmatpush1.msra.mxu0 %v912_v39 }
  0x9c   : > { %2670 = vmatmul.mubr.msk.f32.vlgmr.msra.gmra.mxu0 %vm496_vm1, %v931_v41 }
  0x9d   : > { %1010 = vmatprep.mubr.f32.mxu0 %v3248_v0 }
  0xa0   : > { %2671 = vmatmul.mubr.msk.f32.gmra.mxu0 %vm496_vm1, %v933_v27 }
  0xa1   : > { %1016 = vmatprep.mubr.f32.mxu0 %v3248_v0 }
  0xa4   : > { %2672 = vmatmul.mubr.msk.f32.gmra.mxu0 %vm496_vm1, %v932_v42 }
 0x136   : > { %v569_v30 = vpop.f32.mrf.mxu0  ;;  %v658_v43 = vpop.f32.mrf.mxu1 }
 0x137   : > { %v659_v3 = vadd.f32 %v658_v43, %v569_v30 }
 0x138   : > { %v571_v44 = vpop.f32.mrf.mxu0  ;;  %v660_v45 = vpop.f32.mrf.mxu1 }
 0x139   : > { %v661_v63 = vadd.f32 %v660_v45, %v571_v44 }
 0x13e   : > { %v575_v46 = vpop.f32.mrf.mxu0  ;;  %v664_v40 = vpop.f32.mrf.mxu1 }
 0x13f   : > { %v665_v62 = vadd.f32 %v664_v40, %v575_v46 }
 0x140   : > { %v577_v47 = vpop.f32.mrf.mxu0  ;;  %v666_v48 = vpop.f32.mrf.mxu1 }
 0x141   : > { %v667_v4 = vadd.f32 %v666_v48, %v577_v47 }
 0x144   : > { %v581_v49 = vpop.f32.mrf.mxu0  ;;  %v670_v51 = vpop.f32.mrf.mxu1 }
 0x145   : > { %v671_v9 = vadd.f32 %v670_v51, %v581_v49 }
 0x146   : > { %v583_v50 = vpop.f32.mrf.mxu0  ;;  %v672_v53 = vpop.f32.mrf.mxu1 }
 0x147   : > { %v673_v15 = vadd.f32 %v672_v53, %v583_v50 }
 0x14a   : > { %v770_v52 = vpop.f32.mrf.mxu0 }
 0x14b   : > { %v787_v10 = vadd.f32 %v770_v52, %v659_v3 }
 0x14c   : > { %v772_v54 = vpop.f32.mrf.mxu0 }
 0x14d   : > { %v888_v55 = vpop.f32.mrf.mxu1  ;;  %v788_v7 = vadd.f32 %v772_v54, %v661_v63 }
 0x14e   : > { %v905_v22 = vadd.f32 %v888_v55, %v787_v10  ;;  %v2708_v10 = vld [vmem:[%s4585_s4 + $0x208] sm:$0xff] }
 0x14f   : > { %v890_v57 = vpop.f32.mrf.mxu1 }
 0x150   : > { %v776_v56 = vpop.f32.mrf.mxu0  ;;  %v906_v19 = vadd.f32 %v890_v57, %v788_v7  ;;  %v1228_v7 = vld [vmem:[%s4585_s4 + $0xf8] sm:$0xff] }
 0x151   : > { %v894_v59 = vpop.f32.mrf.mxu1  ;;  %v789_v5 = vadd.f32 %v776_v56, %v665_v62  ;;  %1364 = vmatprep.subr.mxu0 %v1228_v7  ;;  %v1197_v7 = vld [vmem:[%s4585_s4] sm:$0xff] }
 0x152   : > { %v778_v58 = vpop.f32.mrf.mxu0 }
 0x153   : > { %v896_v1 = vpop.f32.mrf.mxu1  ;;  %v790_v11 = vadd.f32 %v778_v58, %v667_v4  ;;  %v907_v16 = vadd.f32 %v894_v59, %v789_v5  ;;  %v1081_v4 = vld [vmem:[#allocation7] sm:$0xff]  ;;  %v1082_v5 = vld [vmem:[#allocation7 + $0x8] sm:$0x7f] }
 0x154   : > { %v782_v60 = vpop.f32.mrf.mxu0 }
 0x155   : > { %v900_v12 = vpop.f32.mrf.mxu1  ;;  %v791_v17 = vadd.f32 %v782_v60, %v671_v9  ;;  %v908_v23 = vadd.f32 %v896_v1, %v790_v11  ;;  %v1226_v9 = vld [vmem:[%s4585_s4 + $0xe8] sm:$0xff]  ;;  %v1225_v11 = vld [vmem:[%s4585_s4 + $0xe0] sm:$0xff] }
 0x156   : > { %v784_v2 = vpop.f32.mrf.mxu0 }
 0x157   : > { %v792_v24 = vadd.f32 %v784_v2, %v673_v15  ;;  %v902_v26 = vpop.f32.mrf.mxu1  ;;  %v909_v32 = vadd.f32 %v900_v12, %v791_v17  ;;  %v2707_v12 = vld [vmem:[%s4585_s4 + $0x200] sm:$0xff]  ;;  %v2706_v15 = vld [vmem:[%s4585_s4 + $0x1f8] sm:$0xff]  ;;  %v2705_v17 = vld [vmem:[%s4585_s4 + $0x1f0] sm:$0xff] }
 0x159   : > { %v910_v37 = vadd.f32 %v902_v26, %v792_v24  ;;  %v1220_v24 = vld [vmem:[%s4585_s4 + $0xb8] sm:$0xff]  ;;  %v1219_v26 = vld [vmem:[%s4585_s4 + $0xb0] sm:$0xff] }
 0x15c   : > { %v1006_v8 = vpop.f32.mrf.mxu0 }
 0x15d   : > { %v1023_v33 = vadd.f32 %v1006_v8, %v905_v22  ;;  %v1227_v8 = vld [vmem:[%s4585_s4 + $0xf0] sm:$0xff]  ;;  %v1221_v22 = vld [vmem:[%s4585_s4 + $0xc0] sm:$0xff] }
 0x15e   : > { %v1008_v13 = vpop.f32.mrf.mxu0  ;;  %1365 = vmatpush1.msra.mxu0 %v1227_v8  ;;  %v2679_v8 = vld [vmem:[%s4585_s4 + $0x120] sm:$0xff] }
 0x15f   : > { %v1024_v28 = vadd.f32 %v1008_v13, %v906_v19  ;;  %v1041_v30 = vadd.f32 %v1034_v34, %v1023_v33  ;;  %v1224_v13 = vld [vmem:[%s4585_s4 + $0xd8] sm:$0xff]  ;;  %1366 = vmatprep.subr.mxu0 %v1226_v9  ;;  %v2704_v19 = vld [vmem:[%s4585_s4 + $0x1e8] sm:$0xff] }
 0x160   : > { %v1012_v21 = vpop.f32.mrf.mxu0  ;;  %1367 = vmatpush1.msra.mxu0 %v1225_v11  ;;  %v2698_v33 = vld [vmem:[%s4585_s4 + $0x1b8] sm:$0xff]  ;;  %v1230_v9 = vld [vmem:[%s4585_s4 + $0x108] sm:$0xff]  ;;  %v1229_v11 = vld [vmem:[%s4585_s4 + $0x100] sm:$0xff] }
 0x161   : > { %v1025_v25 = vadd.f32 %v1012_v21, %v907_v16  ;;  %v1042_v42 = vadd.f32 %v1038_v29, %v1024_v28  ;;  %v1047_v49 = vmax.f32 %v1041_v30, 0.0  ;;  %v1223_v16 = vld [vmem:[%s4585_s4 + $0xd0] sm:$0xff]  ;;  %v2703_v21 = vld [vmem:[%s4585_s4 + $0x1e0] sm:$0xff]  ;;  %1368 = vmatprep.subr.mxu0 %v1224_v13  ;;  %v2700_v28 = vld [vmem:[%s4585_s4 + $0x1c8] sm:$0xff] }
 0x162   : > { %v1014_v31 = vpop.f32.mrf.mxu0  ;;  %1369 = vmatpush1.msra.mxu0 %v1223_v16  ;;  %v2693_v30 = vld [vmem:[%s4585_s4 + $0x190] sm:$0xff]  ;;  %v2782_v13 = vld [vmem:[%s4585_s4 + $0x428] sm:$0xff]  ;;  %v2710_v16 = vld [vmem:[%s4585_s4 + $0x218] sm:$0xff] }
 0x163   : > { %v1026_v35 = vadd.f32 %v1014_v31, %v908_v23  ;;  %v1043_v38 = vadd.f32 %v1034_v34, %v1025_v25  ;;  %v1048_v48 = vmax.f32 %v1042_v42, 0.0  ;;  %v1059_v56 = vrot.slane %v1047_v49, 1  ;;  %v2702_v23 = vld [vmem:[%s4585_s4 + $0x1d8] sm:$0xff]  ;;  %v2701_v25 = vld [vmem:[%s4585_s4 + $0x1d0] sm:$0xff]  ;;  %1370 = vmatprep.subr.mxu0 %v1222_v20  ;;  %v2699_v31 = vld [vmem:[%s4585_s4 + $0x1c0] sm:$0xff] }
 0x164   : > { %v1018_v36 = vpop.f32.mrf.mxu0  ;;  %1371 = vmatpush1.msra.mxu0 %v1221_v22  ;;  %v2694_v42 = vld [vmem:[%s4585_s4 + $0x198] sm:$0xff] }
 0x165   : > { %v1044_v39 = vadd.f32 %v1038_v29, %v1026_v35  ;;  %v1027_v41 = vadd.f32 %v1018_v36, %v909_v32  ;;  %v1049_v46 = vmax.f32 %v1043_v38, 0.0  ;;  %v1062_v55 = vrot.slane %v1048_v48, 1  ;;  %1372 = vmatprep.subr.mxu0 %v1220_v24  ;;  %v1217_v32 = vld [vmem:[%s4585_s4 + $0xa0] sm:$0xff]  ;;  %v2697_v35 = vld [vmem:[%s4585_s4 + $0x1b0] sm:$0xff]  ;;  %v1214_v38 = vld [vmem:[%s4585_s4 + $0x88] sm:$0xff] }
 0x166   : > { %v1020_v27 = vpop.f32.mrf.mxu0  ;;  %1373 = vmatpush1.msra.mxu0 %v1219_v26  ;;  %v1215_v36 = vld [vmem:[%s4585_s4 + $0x90] sm:$0xff]  ;;  %v2746_v20 = vld [vmem:[%s4585_s4 + $0x318] sm:$0xff] }
 0x167   : > { %v1045_v43 = vadd.f32 %v1034_v34, %v1027_v41  ;;  %v1028_v44 = vadd.f32 %v1020_v27, %v910_v37  ;;  %v1050_v45 = vmax.f32 %v1044_v39, 0.0  ;;  %v1060_v53 = vrot.slane %v1049_v46, 1  ;;  %v1216_v34 = vld [vmem:[%s4585_s4 + $0x98] sm:$0xff]  ;;  %v2696_v37 = vld [vmem:[%s4585_s4 + $0x1a8] sm:$0xff]  ;;  %v2695_v39 = vld [vmem:[%s4585_s4 + $0x1a0] sm:$0xff] }
 0x168   : > { %v1213_v41 = vld [vmem:[%s4585_s4 + $0x80] sm:$0xff]  ;;  %v1212_v27 = vld [vmem:[%s4585_s4 + $0x78] sm:$0xff] }
 0x169   : > { %v1051_v40 = vmax.f32 %v1045_v43, 0.0  ;;  %v1046_v47 = vadd.f32 %v1038_v29, %v1028_v44  ;;  %v1063_v52 = vrot.slane %v1050_v45, 1  ;;  %v1061_v63 = vsel %vm490_vm0, %v1059_v56, %v1060_v53  ;;  %v1218_v29 = vld [vmem:[%s4585_s4 + $0xa8] sm:$0xff]  ;;  %v1211_v43 = vld [vmem:[%s4585_s4 + $0x70] sm:$0xff]  ;;  %v1204_v56 = vld [vmem:[%s4585_s4 + $0x38] sm:$0xff] }
 0x16a   : > { %v1075_v3 = vmax.f32 %v1047_v49, %v1061_v63  ;;  %1374 = vmatprep.subr.mxu0 %v1218_v29  ;;  %v2692_v44 = vld [vmem:[%s4585_s4 + $0x188] sm:$0xff]  ;;  %v2689_v49 = vld [vmem:[%s4585_s4 + $0x170] sm:$0xff]  ;;  %v1200_v63 = vld [vmem:[%s4585_s4 + $0x18] sm:$0xff] }
 0x16b   : > { %v1065_v50 = vrot.slane %v1051_v40, 1  ;;  %v1052_v51 = vmax.f32 %v1046_v47, 0.0  ;;  %v1064_v62 = vsel %vm490_vm0, %v1062_v55, %v1063_v52  ;;  %1375 = vmatpush1.msra.mxu0 %v1217_v32  ;;  %v2690_v47 = vld [vmem:[%s4585_s4 + $0x178] sm:$0xff] }
 0x16c   : > { %v1076_v2 = vmax.f32 %v1048_v48, %v1064_v62  ;;  %1376 = vmatprep.subr.mxu0 %v1216_v34  ;;  %v1208_v48 = vld [vmem:[%s4585_s4 + $0x58] sm:$0xff]  ;;  %v2683_v62 = vld [vmem:[%s4585_s4 + $0x140] sm:$0xff] }
 0x16d   : > { %v1067_v54 = vrot.slane %v1052_v51, 1  ;;  %v1066_v59 = vsel %vm490_vm0, %v1060_v53, %v1065_v50  ;;  %v1079_v60 = vmax.f32 %v1051_v40, %v1065_v50  ;;  %1377 = vmatpush1.msra.mxu0 %v1215_v36  ;;  %v1209_v40 = vld [vmem:[%s4585_s4 + $0x60] sm:$0xff]  ;;  %v1207_v50 = vld [vmem:[%s4585_s4 + $0x50] sm:$0xff]  ;;  %v2686_v55 = vld [vmem:[%s4585_s4 + $0x158] sm:$0xff] }
 0x16e   : > { %v1077_v1 = vmax.f32 %v1049_v46, %v1066_v59  ;;  %1378 = vmatprep.subr.mxu0 %v1214_v38  ;;  %v2691_v46 = vld [vmem:[%s4585_s4 + $0x180] sm:$0xff]  ;;  %v2684_v59 = vld [vmem:[%s4585_s4 + $0x148] sm:$0xff]  ;;  %v2780_v38 = vld [vmem:[%s4585_s4 + $0x418] sm:$0xff] }
 0x16f   : > { %v1080_v57 = vmax.f32 %v1052_v51, %v1067_v54  ;;  %v1068_v58 = vsel %vm490_vm0, %v1063_v52, %v1067_v54  ;;  %1379 = vmatpush1.msra.mxu0 %v1213_v41  ;;  %v2688_v51 = vld [vmem:[%s4585_s4 + $0x168] sm:$0xff]  ;;  %v2687_v53 = vld [vmem:[%s4585_s4 + $0x160] sm:$0xff] }
 0x170   : > { %v1078_v61 = vmax.f32 %v1050_v45, %v1068_v58  ;;  %v1210_v45 = vld [vmem:[%s4585_s4 + $0x68] sm:$0xff]  ;;  %1380 = vmatprep.subr.mxu0 %v1212_v27  ;;  %v1205_v54 = vld [vmem:[%s4585_s4 + $0x40] sm:$0xff]  ;;  %v1203_v58 = vld [vmem:[%s4585_s4 + $0x30] sm:$0xff] }
 0x171   : > { %2673 = vmatprep.subr.msk.mxu1 %vm1090_vm5, %v1080_v57  ;;  %1381 = vmatpush1.msra.mxu0 %v1211_v43  ;;  %v1206_v52 = vld [vmem:[%s4585_s4 + $0x48] sm:$0xff]  ;;  %v2685_v57 = vld [vmem:[%s4585_s4 + $0x150] sm:$0xff] }
 0x172   : > { %2674 = vmatpush1.msk.msra.mxu1 %vm1090_vm5, %v1079_v60  ;;  %1382 = vmatprep.subr.mxu0 %v1210_v45  ;;  %v1202_v60 = vld [vmem:[%s4585_s4 + $0x28] sm:$0xff]  ;;  %v2745_v45 = vld [vmem:[%s4585_s4 + $0x310] sm:$0xff] }
 0x173   : > { %1125 = vmatprep.subr.mxu1 %v1078_v61  ;;  %1383 = vmatpush1.msra.mxu0 %v1209_v40  ;;  %v1201_v61 = vld [vmem:[%s4585_s4 + $0x20] sm:$0xff] }
 0x174   : > { %1126 = vmatpush1.msra.mxu1 %v1077_v1  ;;  %1384 = vmatprep.subr.mxu0 %v1208_v48  ;;  %v2682_v1 = vld [vmem:[%s4585_s4 + $0x138] sm:$0xff]  ;;  %v2744_v48 = vld [vmem:[%s4585_s4 + $0x308] sm:$0xff] }
 0x175   : > { %1127 = vmatprep.subr.mxu1 %v1076_v2  ;;  %1385 = vmatpush1.msra.mxu0 %v1207_v50  ;;  %v1199_v2 = vld [vmem:[%s4585_s4 + $0x10] sm:$0xff] }
 0x176   : > { %1128 = vmatpush1.msra.mxu1 %v1075_v3  ;;  %1386 = vmatprep.subr.mxu0 %v1206_v52  ;;  %v2681_v3 = vld [vmem:[%s4585_s4 + $0x130] sm:$0xff]  ;;  %v2743_v52 = vld [vmem:[%s4585_s4 + $0x300] sm:$0xff] }
 0x177   : > { %2675 = vmatmul.mubr.msk.f32.vlgmr.msra.gmra.mxu1 %vm1083_vm6, %v1081_v4  ;;  %1283 = vmatprep.subr.mxu1 %v2708_v10  ;;  %v1198_v4 = vld [vmem:[%s4585_s4 + $0x8] sm:$0xff]  ;;  %v2678_v10 = vld [vmem:[%s4585_s4 + $0x118] sm:$0xff] }
 0x178   : > { %1167 = vmatprep.mubr.f32.mxu1 %v3248_v0  ;;  %1284 = vmatpush1.msra.mxu1 %v2707_v12  ;;  %v2677_v12 = vld [vmem:[%s4585_s4 + $0x110] sm:$0xff] }
 0x179   : > { %1285 = vmatprep.subr.mxu1 %v2706_v15  ;;  %1387 = vmatpush1.msra.mxu0 %v1205_v54 }
 0x17a   : > { %1286 = vmatpush1.msra.mxu1 %v2705_v17  ;;  %1388 = vmatprep.subr.mxu0 %v1204_v56  ;;  %v2775_v56 = vld [vmem:[%s4585_s4 + $0x3f0] sm:$0xff] }
 0x17b   : > { %2676 = vmatmul.mubr.msk.f32.gmra.mxu1 %vm1083_vm6, %v1082_v5  ;;  %1287 = vmatprep.subr.mxu1 %v2704_v19  ;;  %v2680_v5 = vld [vmem:[%s4585_s4 + $0x128] sm:$0xff]  ;;  %v2709_v19 = vld [vmem:[%s4585_s4 + $0x210] sm:$0xff] }
 0x17c   : > { %1288 = vmatpush1.msra.mxu1 %v2703_v21  ;;  %1389 = vmatpush1.msra.mxu0 %v1203_v58 }
 0x17d   : > { %1289 = vmatprep.subr.mxu1 %v2702_v23  ;;  %1390 = vmatprep.subr.mxu0 %v1202_v60  ;;  %v2774_v60 = vld [vmem:[%s4585_s4 + $0x3e8] sm:$0xff] }
 0x17e   : > { %1290 = vmatpush1.msra.mxu1 %v2701_v25  ;;  %1391 = vmatpush1.msra.mxu0 %v1201_v61  ;;  %v2740_v61 = vld [vmem:[%s4585_s4 + $0x2e8] sm:$0xff] }
 0x17f   : > { %1291 = vmatprep.subr.mxu1 %v2700_v28  ;;  %1392 = vmatprep.subr.mxu0 %v1200_v63  ;;  %v2773_v63 = vld [vmem:[%s4585_s4 + $0x3e0] sm:$0xff] }
 0x180   : > { %1292 = vmatpush1.msra.mxu1 %v2699_v31  ;;  %1393 = vmatpush1.msra.mxu0 %v1199_v2 }
 0x181   : > { %1293 = vmatprep.subr.mxu1 %v2698_v33  ;;  %1394 = vmatprep.subr.mxu0 %v1198_v4  ;;  %v2738_v4 = vld [vmem:[%s4585_s4 + $0x2d8] sm:$0xff] }
 0x182   : > { %1294 = vmatpush1.msra.mxu1 %v2697_v35  ;;  %1395 = vmatpush1.msra.mxu0 %v1197_v7  ;;  %v2737_v7 = vld [vmem:[%s4585_s4 + $0x2d0] sm:$0xff] }
 0x183   : > { %1295 = vmatprep.subr.mxu1 %v2696_v37  ;;  %1426 = vmatprep.subr.mxu0 %v1230_v9  ;;  %v2781_v37 = vld [vmem:[%s4585_s4 + $0x420] sm:$0xff]  ;;  %v2736_v9 = vld [vmem:[%s4585_s4 + $0x2c8] sm:$0xff] }
 0x184   : > { %1296 = vmatpush1.msra.mxu1 %v2695_v39  ;;  %1427 = vmatpush2.msra.mxu0 %v1229_v11  ;;  %v2735_v11 = vld [vmem:[%s4585_s4 + $0x2c0] sm:$0xff] }
 0x185   : > { %1297 = vmatprep.subr.mxu1 %v2694_v42  ;;  %1616 = vmatprep.subr.mxu0 %v2782_v13  ;;  %v2779_v42 = vld [vmem:[%s4585_s4 + $0x410] sm:$0xff]  ;;  %v2734_v13 = vld [vmem:[%s4585_s4 + $0x2b8] sm:$0xff] }
 0x186   : > { %1298 = vmatpush1.msra.mxu1 %v2693_v30 }
 0x187   : > { %1299 = vmatprep.subr.mxu1 %v2692_v44 }
 0x188   : > { %1300 = vmatpush1.msra.mxu1 %v2691_v46  ;;  %v2778_v46 = vld [vmem:[%s4585_s4 + $0x408] sm:$0xff] }
 0x189   : > { %1301 = vmatprep.subr.mxu1 %v2690_v47 }
 0x18a   : > { %1302 = vmatpush1.msra.mxu1 %v2689_v49  ;;  %v2777_v49 = vld [vmem:[%s4585_s4 + $0x400] sm:$0xff] }
 0x18b   : > { %1303 = vmatprep.subr.mxu1 %v2688_v51 }
 0x18c   : > { %1304 = vmatpush1.msra.mxu1 %v2687_v53  ;;  %v2776_v53 = vld [vmem:[%s4585_s4 + $0x3f8] sm:$0xff] }
 0x18d   : > { %1305 = vmatprep.subr.mxu1 %v2686_v55  ;;  %v2742_v55 = vld [vmem:[%s4585_s4 + $0x2f8] sm:$0xff] }
 0x18e   : > { %1306 = vmatpush1.msra.mxu1 %v2685_v57 }
 0x18f   : > { %1307 = vmatprep.subr.mxu1 %v2684_v59  ;;  %v2741_v59 = vld [vmem:[%s4585_s4 + $0x2f0] sm:$0xff] }
 0x190   : > { %1308 = vmatpush1.msra.mxu1 %v2683_v62 }
 0x191   : > { %1309 = vmatprep.subr.mxu1 %v2682_v1  ;;  %v2739_v1 = vld [vmem:[%s4585_s4 + $0x2e0] sm:$0xff] }
 0x192   : > { %1310 = vmatpush1.msra.mxu1 %v2681_v3  ;;  %v2772_v3 = vld [vmem:[%s4585_s4 + $0x3d8] sm:$0xff] }
 0x193   : > { %1311 = vmatprep.subr.mxu1 %v2680_v5  ;;  %v2771_v5 = vld [vmem:[%s4585_s4 + $0x3d0] sm:$0xff] }
 0x194   : > { %1312 = vmatpush1.msra.mxu1 %v2679_v8  ;;  %v2770_v8 = vld [vmem:[%s4585_s4 + $0x3c8] sm:$0xff] }
 0x195   : > { %1313 = vmatprep.subr.mxu1 %v2678_v10  ;;  %v2769_v10 = vld [vmem:[%s4585_s4 + $0x3c0] sm:$0xff] }
 0x196   : > { %1314 = vmatpush1.msra.mxu1 %v2677_v12  ;;  %v2768_v12 = vld [vmem:[%s4585_s4 + $0x3b8] sm:$0xff] }
 0x197   : > { %1345 = vmatprep.subr.mxu1 %v2710_v16  ;;  %v2733_v16 = vld [vmem:[%s4585_s4 + $0x2b0] sm:$0xff] }
 0x198   : > { %1346 = vmatpush2.msra.mxu1 %v2709_v19  ;;  %v2732_v19 = vld [vmem:[%s4585_s4 + $0x2a8] sm:$0xff] }
 0x199   : > { %1488 = vmatprep.subr.mxu1 %v2746_v20  ;;  %v2765_v20 = vld [vmem:[%s4585_s4 + $0x3a0] sm:$0xff] }
 0x237   : > { %v1163_v15 = vpop.f32.mrf.mxu1 }
 0x239   : > { %v1165_v17 = vpop.f32.mrf.mxu1 }
 0x23b   : > { %v1169_v21 = vpop.f32.mrf.mxu1 }
 0x23c   : > { %v3030_v22 = vpack.i.bf16 %v1169_v21, %v1163_v15 }
 0x23d   : > { %v1171_v23 = vpop.f32.mrf.mxu1 }
 0x23e   : > { %3031 = vrot.lane.b32.xlu0 %v3030_v22, %s3249_s15  ;;  %1184 = vrot.lane.b32.xlu1 %v1171_v23, %s3249_s15  ;;  %v2764_v22 = vld [vmem:[%s4585_s4 + $0x398] sm:$0xff] }
 0x242   : > { %1180 = vrot.lane.b32.xlu0 %v1165_v17, %s3249_s15  ;;  %s445_s15 = scalar_lea.vmem [#allocation11], %s444_s2 }
 0x243   : > { %s2538_s24 = sshll.u32 %s445_s15, 4  ;;  %s2539_s24 = int_to_ptr.vmem [resolvable:$true] %s2538_s24 }
 0x244   : > { %s3165_s30 = scalar_lea.vmem %s2539_s24, 16  ;;  %p3172_p7 = scmp.lt.s32.totalorder %s2539_s24, %s3170_s21 }
 0x245   : > { %p3166_p4 = scmp.ne.s32.totalorder %s2539_s24, %s3165_s30 }
 0x247   : > { %p3167_p6 = pnand %p3166_p4, %p4613_p5 }
 0x249   : > { %p3168_p10 = pneg %p3167_p6 }
 0x2b0   : > { %v3032_v24 = vpop.permute.xlu0 %3031  ;;  %v1185_v25 = vpop.permute.xlu1 %1184 }
 0x2b1   : > { %v3034_v26 = vunpack.i.h.bf16 %v3032_v24  ;;  %v3033_v28 = vunpack.i.l.bf16 %v3032_v24  ;;  %v3732_v31 = vmax.f32 %v1171_v23, %v1185_v25  ;;  %v2730_v23 = vld [vmem:[%s4585_s4 + $0x298] sm:$0xff]  ;;  %v2763_v24 = vld [vmem:[%s4585_s4 + $0x390] sm:$0xff] }
 0x2b3   : > { %v1188_v29 = vsel %vm1186_vm7, %v3034_v26, %v1185_v25  ;;  %v1274_v41 = vrot.slane %v3732_v31, 1  ;;  %v1608_v54 = vrot.slane %v3732_v31, 3  ;;  %v1480_v62 = vrot.slane %v3732_v31, 2  ;;  %v2729_v25 = vld [vmem:[%s4585_s4 + $0x290] sm:$0xff]  ;;  %v2762_v26 = vld [vmem:[%s4585_s4 + $0x388] sm:$0xff] }
 0x2b4   : > { %v3734_v32 = vmax.f32 %v1169_v21, %v1188_v29  ;;  %v1181_v33 = vpop.permute.xlu0 %1180  ;;  %v2731_v21 = vld [vmem:[%s4585_s4 + $0x2a0] sm:$0xff] }
 0x2b5   : > { %v1187_v34 = vsel %vm1186_vm7, %v3033_v28, %v1181_v33  ;;  %v3736_v35 = vmax.f32 %v1165_v17, %v1181_v33  ;;  %v2766_v17 = vld [vmem:[%s4585_s4 + $0x3a8] sm:$0xff]  ;;  %v2761_v29 = vld [vmem:[%s4585_s4 + $0x380] sm:$0xff] }
 0x2b6   : > { %v3738_v36 = vmax.f32 %v1163_v15, %v1187_v34  ;;  %v1271_v30 = vrot.slane %v3734_v32, 1  ;;  %v1733_v40 = vrot.slane %v3734_v32, 4  ;;  %v2767_v15 = vld [vmem:[%s4585_s4 + $0x3b0] sm:$0xff]  ;;  %v2728_v28 = vld [vmem:[%s4585_s4 + $0x288] sm:$0xff]  ;;  %v2727_v33 = vld [vmem:[%s4585_s4 + $0x280] sm:$0xff] }
 0x2b7   : > { %2713 = vmatprep.mubr.msk.f32.mxu0 %vm1278_vm8, %v3736_v35  ;;  %v1273_v39 = vrot.slane %v3736_v35, 1  ;;  %v1607_v50 = vrot.slane %v3736_v35, 3  ;;  %v1479_v57 = vrot.slane %v3736_v35, 2  ;;  %v2760_v34 = vld [vmem:[%s4585_s4 + $0x378] sm:$0xff] }
 0x2b8   : > { %1429 = vmatmul.mubr.f32.vlgmr.msra.gmra.mxu0 %v3738_v36  ;;  %v1270_v27 = vrot.slane %v3738_v36, 1  ;;  %v1732_v43 = vrot.slane %v3738_v36, 4 }
 0x2b9   : > { %1617 = vmatpush1.msra.mxu0 %v2781_v37  ;;  %2714 = vmatprep.mubr.msk.f32.mxu0 %vm1278_vm8, %v3732_v31  ;;  %v1275_v44 = vsel %vm490_vm0, %v1273_v39, %v1274_v41  ;;  %v1609_v58 = vsel %vm810_vm3, %v1607_v50, %v1608_v54  ;;  %v1481_v2 = vsel %vm692_vm2, %v1479_v57, %v1480_v62  ;;  %v2726_v37 = vld [vmem:[%s4585_s4 + $0x278] sm:$0xff]  ;;  %v2725_v39 = vld [vmem:[%s4585_s4 + $0x270] sm:$0xff]  ;;  %v2719_v50 = vld [vmem:[%s4585_s4 + $0x240] sm:$0xff] }
 0x2ba   : > { %1618 = vmatprep.subr.mxu0 %v2780_v38  ;;  %2711 = vmatprep.mubr.msk.f32.mxu1 %vm1278_vm8, %v1275_v44  ;;  %v1272_v47 = vsel %vm490_vm0, %v1270_v27, %v1271_v30  ;;  %v3779_v51 = vsel %vm928_vm4, %v1732_v43, %v1733_v40  ;;  %v2759_v38 = vld [vmem:[%s4585_s4 + $0x370] sm:$0xff]  ;;  %v2757_v27 = vld [vmem:[%s4585_s4 + $0x360] sm:$0xff]  ;;  %v2756_v43 = vld [vmem:[%s4585_s4 + $0x358] sm:$0xff] }
 0x2bb   : > { %1619 = vmatpush1.msra.mxu0 %v2779_v42  ;;  %1348 = vmatmul.mubr.f32.vlgmr.msra.gmra.mxu1 %v1272_v47  ;;  %v2724_v42 = vld [vmem:[%s4585_s4 + $0x268] sm:$0xff]  ;;  %v2722_v44 = vld [vmem:[%s4585_s4 + $0x258] sm:$0xff] }
 0x2bc   : > { %1489 = vmatpush1.msra.mxu1 %v2745_v45  ;;  %1620 = vmatprep.subr.mxu0 %v2778_v46  ;;  %v2755_v45 = vld [vmem:[%s4585_s4 + $0x350] sm:$0xff]  ;;  %v2754_v47 = vld [vmem:[%s4585_s4 + $0x348] sm:$0xff]  ;;  %v2784_v57 = vld [vmem:[%s4585_s4 + $0x438] sm:$0xff] }
 0x2bd   : > { %2712 = vmatprep.mubr.msk.f32.mxu1 %vm1278_vm8, %v1274_v41  ;;  %1435 = vmatmul.mubr.f32.gmra.mxu0 %v3734_v32  ;;  %v2758_v41 = vld [vmem:[%s4585_s4 + $0x368] sm:$0xff]  ;;  %v2721_v46 = vld [vmem:[%s4585_s4 + $0x250] sm:$0xff] }
 0x2be   : > { %1490 = vmatprep.subr.mxu1 %v2744_v48  ;;  %1621 = vmatpush1.msra.mxu0 %v2777_v49  ;;  %v2720_v48 = vld [vmem:[%s4585_s4 + $0x248] sm:$0xff]  ;;  %v2753_v49 = vld [vmem:[%s4585_s4 + $0x340] sm:$0xff] }
 0x2bf   : > { %1491 = vmatpush1.msra.mxu1 %v2743_v52  ;;  %1622 = vmatprep.subr.mxu0 %v2776_v53  ;;  %v2752_v52 = vld [vmem:[%s4585_s4 + $0x338] sm:$0xff] }
 0x2c0   : > { %2785 = vmatprep.mubr.msk.f32.mxu0 %vm1278_vm8, %v1609_v58  ;;  %1492 = vmatprep.subr.mxu1 %v2742_v55  ;;  %v2718_v53 = vld [vmem:[%s4585_s4 + $0x238] sm:$0xff]  ;;  %v2751_v55 = vld [vmem:[%s4585_s4 + $0x330] sm:$0xff]  ;;  %v2716_v58 = vld [vmem:[%s4585_s4 + $0x228] sm:$0xff] }
 0x2c1   : > { %1623 = vmatpush1.msra.mxu0 %v2775_v56  ;;  %1354 = vmatmul.mubr.f32.gmra.mxu1 %v1271_v30  ;;  %v2723_v30 = vld [vmem:[%s4585_s4 + $0x260] sm:$0xff]  ;;  %v2717_v56 = vld [vmem:[%s4585_s4 + $0x230] sm:$0xff] }
 0x2c2   : > { %1493 = vmatpush1.msra.mxu1 %v2741_v59  ;;  %1624 = vmatprep.subr.mxu0 %v2774_v60  ;;  %v1604_v59 = vrot.slane %v3738_v36, 3  ;;  %v2783_v60 = vld [vmem:[%s4585_s4 + $0x430] sm:$0xff] }
 0x2c3   : > { %1494 = vmatprep.subr.mxu1 %v2740_v61  ;;  %2749 = vmatprep.mubr.msk.f32.mxu1 %vm1278_vm8, %v1481_v2  ;;  %v2715_v61 = vld [vmem:[%s4585_s4 + $0x220] sm:$0xff]  ;;  %v1476_v2 = vrot.slane %v3738_v36, 2  ;;  %v2817_v36 = vld [vmem:[%s4585_s4 + $0x530] sm:$0xff] }
 0x2c4   : > { %1625 = vmatpush1.msra.mxu0 %v2773_v63  ;;  %1495 = vmatpush1.msra.mxu1 %v2739_v1  ;;  %v1605_v63 = vrot.slane %v3734_v32, 3  ;;  %v2748_v1 = vld [vmem:[%s4585_s4 + $0x328] sm:$0xff] }
 0x2c5   : > { %1626 = vmatprep.subr.mxu0 %v2772_v3  ;;  %1496 = vmatprep.subr.mxu1 %v2738_v4  ;;  %v2747_v3 = vld [vmem:[%s4585_s4 + $0x320] sm:$0xff] }
 0x2c6   : > { %1627 = vmatpush1.msra.mxu0 %v2771_v5  ;;  %1497 = vmatpush1.msra.mxu1 %v2737_v7  ;;  %v1606_v4 = vsel %vm810_vm3, %v1604_v59, %v1605_v63  ;;  %v1477_v5 = vrot.slane %v3734_v32, 2  ;;  %v2818_v7 = vld [vmem:[%s4585_s4 + $0x538] sm:$0xff] }
 0x2c7   : > { %1628 = vmatprep.subr.mxu0 %v2770_v8  ;;  %1498 = vmatprep.subr.mxu1 %v2736_v9  ;;  %v2816_v9 = vld [vmem:[%s4585_s4 + $0x528] sm:$0xff] }
 0x2c8   : > { %1629 = vmatpush1.msra.mxu0 %v2769_v10  ;;  %1499 = vmatpush1.msra.mxu1 %v2735_v11  ;;  %v1478_v8 = vsel %vm692_vm2, %v1476_v2, %v1477_v5  ;;  %v2815_v10 = vld [vmem:[%s4585_s4 + $0x520] sm:$0xff]  ;;  %v1735_v11 = vrot.slane %v3736_v35, 4  ;;  %v2812_v35 = vld [vmem:[%s4585_s4 + $0x508] sm:$0xff]  ;;  %v1825_v2 = vld [vmem:[#allocation8] sm:$0x3] }
 0x2c9   : > { %1630 = vmatprep.subr.mxu0 %v2768_v12  ;;  %1500 = vmatprep.subr.mxu1 %v2734_v13  ;;  %v2813_v12 = vld [vmem:[%s4585_s4 + $0x510] sm:$0xff]  ;;  %v1736_v13 = vrot.slane %v3732_v31, 4 }
 0x2ca   : > { %1631 = vmatpush1.msra.mxu0 %v2767_v15  ;;  %1501 = vmatpush1.msra.mxu1 %v2733_v16  ;;  %v2811_v15 = vld [vmem:[%s4585_s4 + $0x500] sm:$0xff]  ;;  %v2810_v16 = vld [vmem:[%s4585_s4 + $0x4f8] sm:$0xff] }
 0x2cb   : > { %1632 = vmatprep.subr.mxu0 %v2766_v17  ;;  %1502 = vmatprep.subr.mxu1 %v2732_v19  ;;  %v2809_v17 = vld [vmem:[%s4585_s4 + $0x4f0] sm:$0xff]  ;;  %v2808_v19 = vld [vmem:[%s4585_s4 + $0x4e8] sm:$0xff] }
 0x2cc   : > { %1633 = vmatpush1.msra.mxu0 %v2765_v20  ;;  %1503 = vmatpush1.msra.mxu1 %v2731_v21  ;;  %v2807_v20 = vld [vmem:[%s4585_s4 + $0x4e0] sm:$0xff]  ;;  %v2806_v21 = vld [vmem:[%s4585_s4 + $0x4d8] sm:$0xff] }
 0x2cd   : > { %1634 = vmatprep.subr.mxu0 %v2764_v22  ;;  %1504 = vmatprep.subr.mxu1 %v2730_v23  ;;  %v2805_v22 = vld [vmem:[%s4585_s4 + $0x4d0] sm:$0xff]  ;;  %v2804_v23 = vld [vmem:[%s4585_s4 + $0x4c8] sm:$0xff] }
 0x2ce   : > { %1635 = vmatpush1.msra.mxu0 %v2763_v24  ;;  %1505 = vmatpush1.msra.mxu1 %v2729_v25  ;;  %v2803_v24 = vld [vmem:[%s4585_s4 + $0x4c0] sm:$0xff]  ;;  %v2802_v25 = vld [vmem:[%s4585_s4 + $0x4b8] sm:$0xff] }
 0x2cf   : > { %1636 = vmatprep.subr.mxu0 %v2762_v26  ;;  %1506 = vmatprep.subr.mxu1 %v2728_v28  ;;  %v2801_v26 = vld [vmem:[%s4585_s4 + $0x4b0] sm:$0xff]  ;;  %v2800_v28 = vld [vmem:[%s4585_s4 + $0x4a8] sm:$0xff] }
 0x2d0   : > { %1637 = vmatpush1.msra.mxu0 %v2761_v29  ;;  %1507 = vmatpush1.msra.mxu1 %v2727_v33  ;;  %v2799_v29 = vld [vmem:[%s4585_s4 + $0x4a0] sm:$0xff]  ;;  %v2798_v33 = vld [vmem:[%s4585_s4 + $0x498] sm:$0xff] }
 0x2d1   : > { %1638 = vmatprep.subr.mxu0 %v2760_v34  ;;  %1508 = vmatprep.subr.mxu1 %v2726_v37  ;;  %v2797_v34 = vld [vmem:[%s4585_s4 + $0x490] sm:$0xff]  ;;  %v2796_v37 = vld [vmem:[%s4585_s4 + $0x488] sm:$0xff] }
 0x2d2   : > { %1639 = vmatpush1.msra.mxu0 %v2759_v38  ;;  %1509 = vmatpush1.msra.mxu1 %v2725_v39  ;;  %v2795_v38 = vld [vmem:[%s4585_s4 + $0x480] sm:$0xff]  ;;  %v2794_v39 = vld [vmem:[%s4585_s4 + $0x478] sm:$0xff] }
 0x2d3   : > { %1640 = vmatprep.subr.mxu0 %v2758_v41  ;;  %1510 = vmatprep.subr.mxu1 %v2724_v42  ;;  %v2793_v41 = vld [vmem:[%s4585_s4 + $0x470] sm:$0xff]  ;;  %v2792_v42 = vld [vmem:[%s4585_s4 + $0x468] sm:$0xff] }
 0x2d4   : > { %1641 = vmatpush1.msra.mxu0 %v2757_v27  ;;  %1511 = vmatpush1.msra.mxu1 %v2723_v30  ;;  %v2791_v27 = vld [vmem:[%s4585_s4 + $0x460] sm:$0xff]  ;;  %v2790_v30 = vld [vmem:[%s4585_s4 + $0x458] sm:$0xff] }
 0x2d5   : > { %1642 = vmatprep.subr.mxu0 %v2756_v43  ;;  %1512 = vmatprep.subr.mxu1 %v2722_v44  ;;  %v2789_v43 = vld [vmem:[%s4585_s4 + $0x450] sm:$0xff]  ;;  %v2788_v44 = vld [vmem:[%s4585_s4 + $0x448] sm:$0xff] }
 0x2d6   : > { %1643 = vmatpush1.msra.mxu0 %v2755_v45  ;;  %1513 = vmatpush1.msra.mxu1 %v2721_v46  ;;  %v2787_v45 = vld [vmem:[%s4585_s4 + $0x440] sm:$0xff]  ;;  %v2820_v46 = vld [vmem:[%s4585_s4 + $0x548] sm:$0xff] }
 0x2d7   : > { %1644 = vmatprep.subr.mxu0 %v2754_v47  ;;  %1514 = vmatprep.subr.mxu1 %v2720_v48  ;;  %v2819_v47 = vld [vmem:[%s4585_s4 + $0x540] sm:$0xff] }
 0x2d8   : > { %1645 = vmatpush1.msra.mxu0 %v2753_v49  ;;  %1515 = vmatpush1.msra.mxu1 %v2719_v50 }
 0x2d9   : > { %1646 = vmatprep.subr.mxu0 %v2752_v52  ;;  %1516 = vmatprep.subr.mxu1 %v2718_v53 }
 0x2da   : > { %1647 = vmatpush1.msra.mxu0 %v2751_v55  ;;  %1517 = vmatpush1.msra.mxu1 %v2717_v56 }
 0x2db   : > { %1678 = vmatprep.subr.mxu0 %v2784_v57  ;;  %1518 = vmatprep.subr.mxu1 %v2716_v58 }
 0x2dc   : > { %1679 = vmatpush2.msra.mxu0 %v2783_v60  ;;  %1519 = vmatpush1.msra.mxu1 %v2715_v61 }
 0x2dd   : > { %1681 = vmatmul.mubr.f32.vlgmr.msra.gmra.mxu0 %v1606_v4  ;;  %1550 = vmatprep.subr.mxu1 %v2748_v1 }
 0x2de   : > { %2786 = vmatprep.mubr.msk.f32.mxu0 %vm1278_vm8, %v1608_v54  ;;  %1551 = vmatpush2.msra.mxu1 %v2747_v3  ;;  %v2814_v54 = vld [vmem:[%s4585_s4 + $0x518] sm:$0xff] }
 0x2df   : > { %1553 = vmatmul.mubr.f32.vlgmr.msra.gmra.mxu1 %v1478_v8  ;;  %1744 = vmatprep.subr.mxu1 %v2818_v7 }
 0x2e0   : > { %2750 = vmatprep.mubr.msk.f32.mxu1 %vm1278_vm8, %v1480_v62  ;;  %1745 = vmatpush1.msra.mxu1 %v2817_v36  ;;  %v1737_v62 = vsel %vm928_vm4, %v1735_v11, %v1736_v13 }
 0x2e1   : > { %1687 = vmatmul.mubr.f32.gmra.mxu0 %v1605_v63  ;;  %1746 = vmatprep.subr.mxu1 %v2816_v9  ;;  %v1830_v9 = vrot.slane %v1825_v2, %v1033_v18 }
 0x2e2   : > { %1747 = vmatpush1.msra.mxu1 %v2815_v10  ;;  %1983 = vmatprep.subr.mxu0 %v3248_v0 }
 0x2e3   : > { %1559 = vmatmul.mubr.f32.gmra.mxu1 %v1477_v5  ;;  %1748 = vmatprep.subr.mxu1 %v2814_v54 }
 0x2e4   : > { %1749 = vmatpush1.msra.mxu1 %v2813_v12  ;;  %2821 = vmatprep.mubr.msk.f32.mxu1 %vm1278_vm8, %v1737_v62  ;;  %v1834_v12 = vrot.slane %v1825_v2, %v1037_v14  ;;  %v2831_v2 = vld [vmem:[%s4588_s7 + $0xc0] sm:$0xff] }
 0x2e5   : > { %1750 = vmatprep.subr.mxu1 %v2812_v35 }
 0x2e6   : > { %1751 = vmatpush1.msra.mxu1 %v2811_v15 }
 0x2e7   : > { %1752 = vmatprep.subr.mxu1 %v2810_v16 }
 0x2e8   : > { %1753 = vmatpush1.msra.mxu1 %v2809_v17 }
 0x2e9   : > { %1754 = vmatprep.subr.mxu1 %v2808_v19 }
 0x2ea   : > { %1755 = vmatpush1.msra.mxu1 %v2807_v20 }
 0x2eb   : > { %1756 = vmatprep.subr.mxu1 %v2806_v21 }
 0x2ec   : > { %1757 = vmatpush1.msra.mxu1 %v2805_v22 }
 0x2ed   : > { %1758 = vmatprep.subr.mxu1 %v2804_v23 }
 0x2ee   : > { %1759 = vmatpush1.msra.mxu1 %v2803_v24 }
 0x2ef   : > { %1760 = vmatprep.subr.mxu1 %v2802_v25 }
 0x2f0   : > { %1761 = vmatpush1.msra.mxu1 %v2801_v26 }
 0x2f1   : > { %1762 = vmatprep.subr.mxu1 %v2800_v28 }
 0x2f2   : > { %1763 = vmatpush1.msra.mxu1 %v2799_v29 }
 0x2f3   : > { %1764 = vmatprep.subr.mxu1 %v2798_v33 }
 0x2f4   : > { %1765 = vmatpush1.msra.mxu1 %v2797_v34 }
 0x2f5   : > { %1766 = vmatprep.subr.mxu1 %v2796_v37 }
 0x2f6   : > { %1767 = vmatpush1.msra.mxu1 %v2795_v38 }
 0x2f7   : > { %1768 = vmatprep.subr.mxu1 %v2794_v39 }
 0x2f8   : > { %1769 = vmatpush1.msra.mxu1 %v2793_v41 }
 0x2f9   : > { %1770 = vmatprep.subr.mxu1 %v2792_v42 }
 0x2fa   : > { %1771 = vmatpush1.msra.mxu1 %v2791_v27 }
 0x2fb   : > { %1772 = vmatprep.subr.mxu1 %v2790_v30  ;;  %v1863_v30 = vld [vmem:[#allocation10] sm:$0x1f] }
 0x2fc   : > { %1773 = vmatpush1.msra.mxu1 %v2789_v43  ;;  %v1974_v43 = vld [vmem:[%s4588_s7 + $0x78] sm:$0xff] }
 0x2fd   : > { %1774 = vmatprep.subr.mxu1 %v2788_v44  ;;  %v1973_v44 = vld [vmem:[%s4588_s7 + $0x70] sm:$0xff]  ;;  %1984 = vmatpush1.msra.mxu0 %v1974_v43 }
 0x2fe   : > { %1775 = vmatpush1.msra.mxu1 %v2787_v45  ;;  %v2842_v45 = vld [vmem:[%s4588_s7 + $0x118] sm:$0xff]  ;;  %1985 = vmatprep.subr.mxu0 %v3248_v0  ;;  %v2879_v43 = vld [vmem:[%s4588_s7 + $0x230] sm:$0xff] }
 0x2ff   : > { %1806 = vmatprep.subr.mxu1 %v2820_v46  ;;  %v2841_v46 = vld [vmem:[%s4588_s7 + $0x110] sm:$0xff]  ;;  %1986 = vmatpush1.msra.mxu0 %v1973_v44  ;;  %v2856_v44 = vld [vmem:[%s4588_s7 + $0x180] sm:$0xff] }
 0x300   : > { %1807 = vmatpush2.msra.mxu1 %v2819_v47  ;;  %v1972_v47 = vld [vmem:[%s4588_s7 + $0x68] sm:$0xff]  ;;  %1987 = vmatprep.subr.mxu0 %v3248_v0 }
 0x301   : > { %1809 = vmatmul.mubr.f32.vlgmr.msra.gmra.mxu1 %v3779_v51  ;;  %1988 = vmatpush1.msra.mxu0 %v1972_v47  ;;  %v2877_v47 = vld [vmem:[%s4588_s7 + $0x220] sm:$0xff] }
 0x302   : > { %2822 = vmatprep.mubr.msk.f32.mxu1 %vm1278_vm8, %v1736_v13  ;;  %1989 = vmatprep.subr.mxu0 %v3248_v0 }
 0x305   : > { %1815 = vmatmul.mubr.f32.gmra.mxu1 %v1733_v40 }
 0x306   : > { %1939 = vmatprep.mubr.f32.mxu1 %v3248_v0 }
 0x378   : > { %v1430_v50 = vpop.f32.mrf.mxu0 }
 0x37a   : > { %v1432_v53 = vpop.f32.mrf.mxu0 }
 0x37b   : > { %v1349_v48 = vpop.f32.mrf.mxu1 }
 0x37c   : > { %v1431_v60 = vadd.f32 %v1430_v50, %v1349_v48  ;;  %v2840_v48 = vld [vmem:[%s4588_s7 + $0x108] sm:$0xff]  ;;  %v2839_v50 = vld [vmem:[%s4588_s7 + $0x100] sm:$0xff] }
 0x37d   : > { %v1351_v49 = vpop.f32.mrf.mxu1  ;;  %v1436_v56 = vpop.f32.mrf.mxu0 }
 0x37e   : > { %v1433_v61 = vadd.f32 %v1432_v53, %v1351_v49  ;;  %v1971_v49 = vld [vmem:[%s4588_s7 + $0x60] sm:$0xff]  ;;  %v2838_v53 = vld [vmem:[%s4588_s7 + $0xf8] sm:$0xff] }
 0x37f   : > { %v1438_v58 = vpop.f32.mrf.mxu0  ;;  %1990 = vmatpush1.msra.mxu0 %v1971_v49  ;;  %v2876_v49 = vld [vmem:[%s4588_s7 + $0x218] sm:$0xff] }
 0x380   : > { %1991 = vmatprep.subr.mxu0 %v3248_v0 }
 0x381   : > { %v1355_v52 = vpop.f32.mrf.mxu1 }
 0x382   : > { %v1437_v32 = vadd.f32 %v1436_v56, %v1355_v52  ;;  %v1970_v52 = vld [vmem:[%s4588_s7 + $0x58] sm:$0xff]  ;;  %v2837_v56 = vld [vmem:[%s4588_s7 + $0xf0] sm:$0xff] }
 0x383   : > { %v1357_v55 = vpop.f32.mrf.mxu1  ;;  %1992 = vmatpush1.msra.mxu0 %v1970_v52  ;;  %v2875_v52 = vld [vmem:[%s4588_s7 + $0x210] sm:$0xff] }
 0x384   : > { %v1439_v4 = vadd.f32 %v1438_v58, %v1357_v55  ;;  %v1969_v55 = vld [vmem:[%s4588_s7 + $0x50] sm:$0xff]  ;;  %1993 = vmatprep.subr.mxu0 %v3248_v0  ;;  %v2836_v58 = vld [vmem:[%s4588_s7 + $0xe8] sm:$0xff] }
 0x385   : > { %1994 = vmatpush1.msra.mxu0 %v1969_v55  ;;  %v2874_v55 = vld [vmem:[%s4588_s7 + $0x208] sm:$0xff] }
 0x386   : > { %1995 = vmatprep.subr.mxu0 %v3248_v0 }
 0x39d   : > { %v1682_v51 = vpop.f32.mrf.mxu0 }
 0x39f   : > { %v1554_v57 = vpop.f32.mrf.mxu1  ;;  %v1684_v1 = vpop.f32.mrf.mxu0 }
 0x3a0   : > { %v1565_v63 = vadd.f32 %v1554_v57, %v1431_v60  ;;  %v1968_v57 = vld [vmem:[%s4588_s7 + $0x48] sm:$0xff]  ;;  %v1966_v60 = vld [vmem:[%s4588_s7 + $0x38] sm:$0xff] }
 0x3a1   : > { %v1556_v59 = vpop.f32.mrf.mxu1  ;;  %v1688_v36 = vpop.f32.mrf.mxu0  ;;  %1996 = vmatpush1.msra.mxu0 %v1968_v57  ;;  %v2873_v57 = vld [vmem:[%s4588_s7 + $0x200] sm:$0xff] }
 0x3a2   : > { %v1566_v40 = vadd.f32 %v1556_v59, %v1433_v61  ;;  %v1693_v7 = vadd.f32 %v1682_v51, %v1565_v63  ;;  %v1967_v59 = vld [vmem:[%s4588_s7 + $0x40] sm:$0xff]  ;;  %1997 = vmatprep.subr.mxu0 %v3248_v0  ;;  %v1965_v61 = vld [vmem:[%s4588_s7 + $0x30] sm:$0xff] }
 0x3a3   : > { %v1560_v31 = vpop.f32.mrf.mxu1  ;;  %v1690_v15 = vpop.f32.mrf.mxu0  ;;  %v2835_v51 = vld [vmem:[%s4588_s7 + $0xe0] sm:$0xff]  ;;  %1998 = vmatpush1.msra.mxu0 %v1967_v59  ;;  %v2833_v63 = vld [vmem:[%s4588_s7 + $0xd0] sm:$0xff]  ;;  %v2872_v59 = vld [vmem:[%s4588_s7 + $0x1f8] sm:$0xff] }
 0x3a4   : > { %v1567_v5 = vadd.f32 %v1560_v31, %v1437_v32  ;;  %v1694_v54 = vadd.f32 %v1684_v1, %v1566_v40  ;;  %v2834_v31 = vld [vmem:[%s4588_s7 + $0xd8] sm:$0xff]  ;;  %1999 = vmatprep.subr.mxu0 %v3248_v0  ;;  %v1964_v1 = vld [vmem:[%s4588_s7 + $0x28] sm:$0xff]  ;;  %v1963_v40 = vld [vmem:[%s4588_s7 + $0x20] sm:$0xff] }
 0x3a5   : > { %v1562_v3 = vpop.f32.mrf.mxu1  ;;  %2000 = vmatpush1.msra.mxu0 %v1966_v60  ;;  %v2832_v32 = vld [vmem:[%s4588_s7 + $0xc8] sm:$0xff]  ;;  %v2871_v60 = vld [vmem:[%s4588_s7 + $0x1f0] sm:$0xff] }
 0x3a6   : > { %v1568_v10 = vadd.f32 %v1562_v3, %v1439_v4  ;;  %v1695_v62 = vadd.f32 %v1688_v36, %v1567_v5  ;;  %2001 = vmatprep.subr.mxu0 %v3248_v0  ;;  %v1962_v3 = vld [vmem:[%s4588_s7 + $0x18] sm:$0xff]  ;;  %v1961_v5 = vld [vmem:[%s4588_s7 + $0x10] sm:$0xff]  ;;  %v1960_v36 = vld [vmem:[%s4588_s7 + $0x8] sm:$0xff] }
 0x3a7   : > { %2002 = vmatpush1.msra.mxu0 %v1965_v61  ;;  %v2830_v4 = vld [vmem:[%s4588_s7 + $0xb8] sm:$0xff]  ;;  %v2870_v61 = vld [vmem:[%s4588_s7 + $0x1e8] sm:$0xff] }
 0x3a8   : > { %v1696_v21 = vadd.f32 %v1690_v15, %v1568_v10  ;;  %2003 = vmatprep.subr.mxu0 %v3248_v0  ;;  %v2827_v10 = vld [vmem:[%s4588_s7 + $0xa0] sm:$0xff]  ;;  %v2844_v15 = vld [vmem:[%s4588_s7 + $0x128] sm:$0xff] }
 0x3a9   : > { %2004 = vmatpush1.msra.mxu0 %v1964_v1  ;;  %v2869_v1 = vld [vmem:[%s4588_s7 + $0x1e0] sm:$0xff] }
 0x3aa   : > { %2005 = vmatprep.subr.mxu0 %v3248_v0 }
 0x3ab   : > { %2006 = vmatpush1.msra.mxu0 %v1963_v40  ;;  %v2888_v40 = vld [vmem:[%s4588_s7 + $0x278] sm:$0xff] }
 0x3ac   : > { %2007 = vmatprep.subr.mxu0 %v3248_v0 }
 0x3ad   : > { %2008 = vmatpush1.msra.mxu0 %v1962_v3  ;;  %v2887_v3 = vld [vmem:[%s4588_s7 + $0x270] sm:$0xff] }
 0x3ae   : > { %2009 = vmatprep.subr.mxu0 %v3248_v0 }
 0x3af   : > { %2010 = vmatpush1.msra.mxu0 %v1961_v5  ;;  %v2886_v5 = vld [vmem:[%s4588_s7 + $0x268] sm:$0xff] }
 0x3b0   : > { %2011 = vmatprep.subr.mxu0 %v3248_v0 }
 0x3b1   : > { %2012 = vmatpush1.msra.mxu0 %v1960_v36  ;;  %v2885_v36 = vld [vmem:[%s4588_s7 + $0x260] sm:$0xff] }
 0x3b2   : > { %2013 = vmatprep.subr.mxu0 %v3248_v0 }
 0x3c1   : > { %v1810_v8 = vpop.f32.mrf.mxu1 }
 0x3c2   : > { %v1821_v11 = vadd.f32 %v1810_v8, %v1693_v7  ;;  %v2829_v7 = vld [vmem:[%s4588_s7 + $0xb0] sm:$0xff]  ;;  %v2828_v8 = vld [vmem:[%s4588_s7 + $0xa8] sm:$0xff] }
 0x3c3   : > { %v1812_v13 = vpop.f32.mrf.mxu1 }
 0x3c4   : > { %v1822_v35 = vadd.f32 %v1812_v13, %v1694_v54  ;;  %v1837_v17 = vadd.f32 %v1830_v9, %v1821_v11  ;;  %v1978_v11 = vld [vmem:[%s4588_s7 + $0x98] sm:$0xff]  ;;  %v2845_v13 = vld [vmem:[%s4588_s7 + $0x130] sm:$0xff] }
 0x3c5   : > { %v1816_v16 = vpop.f32.mrf.mxu1  ;;  %v2846_v54 = vld [vmem:[%s4588_s7 + $0x138] sm:$0xff] }
 0x3c6   : > { %v1838_v19 = vadd.f32 %v1834_v12, %v1822_v35  ;;  %v1823_v20 = vadd.f32 %v1816_v16, %v1695_v62  ;;  %v1841_v25 = vmax.f32 %v1837_v17, 0.0  ;;  %v1976_v35 = vld [vmem:[%s4588_s7 + $0x88] sm:$0xff]  ;;  %v1975_v62 = vld [vmem:[%s4588_s7 + $0x80] sm:$0xff] }
 0x3c7   : > { %v1818_v22 = vpop.f32.mrf.mxu1  ;;  %v2843_v16 = vld [vmem:[%s4588_s7 + $0x120] sm:$0xff] }
 0x3c8   : > { %v1839_v23 = vadd.f32 %v1830_v9, %v1823_v20  ;;  %v1824_v24 = vadd.f32 %v1818_v22, %v1696_v21  ;;  %v1842_v18 = vmax.f32 %v1838_v19, 0.0  ;;  %v1849_v6 = vrot.slane %v1841_v25, 1  ;;  %v1959_v9 = vld [vmem:[%s4588_s7] sm:$0xff] }
 0x3c9   : > { %2014 = vmatpush1.msra.mxu0 %v1959_v9 }
 0x3ca   : > { %v1843_v26 = vmax.f32 %v1839_v23, 0.0  ;;  %v1840_v28 = vadd.f32 %v1834_v12, %v1824_v24  ;;  %v1852_v14 = vrot.slane %v1842_v18, 1  ;;  %2039 = vmatprep.subr.mxu0 %v3248_v0  ;;  %v1977_v12 = vld [vmem:[%s4588_s7 + $0x90] sm:$0xff] }
 0x3cb   : > { %2040 = vmatpush2.msra.mxu0 %v1978_v11  ;;  %v2904_v11 = vld [vmem:[%s4588_s7 + $0x2f0] sm:$0xff] }
 0x3cc   : > { %v1850_v29 = vrot.slane %v1843_v26, 1  ;;  %v1844_v33 = vmax.f32 %v1840_v28, 0.0  ;;  %2041 = vmatprep.subr.mxu0 %v3248_v0 }
 0x3cd   : > { %2042 = vmatpush2.msra.mxu0 %v1977_v12  ;;  %v2902_v12 = vld [vmem:[%s4588_s7 + $0x2e0] sm:$0xff] }
 0x3ce   : > { %v1853_v34 = vrot.slane %v1844_v33, 1  ;;  %v1851_v39 = vsel %vm490_vm0, %v1849_v6, %v1850_v29  ;;  %v1861_v41 = vmax.f32 %v1843_v26, %v1850_v29  ;;  %2043 = vmatprep.subr.mxu0 %v3248_v0  ;;  %v2862_v29 = vld [vmem:[%s4588_s7 + $0x1b0] sm:$0xff] }
 0x3cf   : > { %v1859_v27 = vmax.f32 %v1841_v25, %v1851_v39  ;;  %2044 = vmatpush2.msra.mxu0 %v1976_v35  ;;  %v2863_v25 = vld [vmem:[%s4588_s7 + $0x1b8] sm:$0xff]  ;;  %v2900_v35 = vld [vmem:[%s4588_s7 + $0x2d0] sm:$0xff] }
 0x3d0   : > { %v1862_v37 = vmax.f32 %v1844_v33, %v1853_v34  ;;  %v1854_v38 = vsel %vm490_vm0, %v1852_v14, %v1853_v34  ;;  %2045 = vmatprep.subr.mxu0 %v3248_v0  ;;  %v2884_v33 = vld [vmem:[%s4588_s7 + $0x258] sm:$0xff]  ;;  %v2861_v14 = vld [vmem:[%s4588_s7 + $0x1a8] sm:$0xff]  ;;  %v2883_v34 = vld [vmem:[%s4588_s7 + $0x250] sm:$0xff] }
 0x3d1   : > { %v1860_v42 = vmax.f32 %v1842_v18, %v1854_v38  ;;  %2046 = vmatpush2.msra.mxu0 %v1975_v62  ;;  %v2882_v38 = vld [vmem:[%s4588_s7 + $0x248] sm:$0xff]  ;;  %v2859_v39 = vld [vmem:[%s4588_s7 + $0x198] sm:$0xff] }
 0x3d2   : > { %2823 = vmatprep.subr.msk.mxu1 %vm1868_vm9, %v1862_v37  ;;  %2178 = vmatprep.subr.mxu0 %v3248_v0  ;;  %v2860_v37 = vld [vmem:[%s4588_s7 + $0x1a0] sm:$0xff]  ;;  %v2899_v62 = vld [vmem:[%s4588_s7 + $0x2c8] sm:$0xff] }
 0x3d3   : > { %2824 = vmatpush1.msk.msra.mxu1 %vm1868_vm9, %v1861_v41  ;;  %v2881_v41 = vld [vmem:[%s4588_s7 + $0x240] sm:$0xff] }
 0x3d4   : > { %1905 = vmatprep.subr.mxu1 %v1860_v42  ;;  %v2858_v42 = vld [vmem:[%s4588_s7 + $0x190] sm:$0xff] }
 0x3d5   : > { %1906 = vmatpush1.msra.mxu1 %v1859_v27  ;;  %v2880_v27 = vld [vmem:[%s4588_s7 + $0x238] sm:$0xff] }
 0x3d6   : > { %2825 = vmatmul.mubr.msk.f32.vlgmr.msra.gmra.mxu1 %vm1864_vm10, %v1863_v30  ;;  %2081 = vmatprep.subr.mxu1 %v3248_v0  ;;  %v2857_v30 = vld [vmem:[%s4588_s7 + $0x188] sm:$0xff] }
 0x3d7   : > { %2082 = vmatpush1.msra.mxu1 %v2842_v45  ;;  %v2878_v45 = vld [vmem:[%s4588_s7 + $0x228] sm:$0xff] }
 0x3d8   : > { %2083 = vmatprep.subr.mxu1 %v3248_v0 }
 0x3d9   : > { %2084 = vmatpush1.msra.mxu1 %v2841_v46  ;;  %v2855_v46 = vld [vmem:[%s4588_s7 + $0x178] sm:$0xff] }
 0x3da   : > { %2085 = vmatprep.subr.mxu1 %v3248_v0 }
 0x3db   : > { %2086 = vmatpush1.msra.mxu1 %v2840_v48  ;;  %v2854_v48 = vld [vmem:[%s4588_s7 + $0x170] sm:$0xff] }
 0x3dc   : > { %2087 = vmatprep.subr.mxu1 %v3248_v0 }
 0x3dd   : > { %2088 = vmatpush1.msra.mxu1 %v2839_v50  ;;  %v2853_v50 = vld [vmem:[%s4588_s7 + $0x168] sm:$0xff] }
 0x3de   : > { %2089 = vmatprep.subr.mxu1 %v3248_v0 }
 0x3df   : > { %2090 = vmatpush1.msra.mxu1 %v2838_v53  ;;  %v2852_v53 = vld [vmem:[%s4588_s7 + $0x160] sm:$0xff] }
 0x3e0   : > { %2091 = vmatprep.subr.mxu1 %v3248_v0 }
 0x3e1   : > { %2092 = vmatpush1.msra.mxu1 %v2837_v56  ;;  %v2851_v56 = vld [vmem:[%s4588_s7 + $0x158] sm:$0xff] }
 0x3e2   : > { %2093 = vmatprep.subr.mxu1 %v3248_v0 }
 0x3e3   : > { %2094 = vmatpush1.msra.mxu1 %v2836_v58  ;;  %v2850_v58 = vld [vmem:[%s4588_s7 + $0x150] sm:$0xff] }
 0x3e4   : > { %2095 = vmatprep.subr.mxu1 %v3248_v0 }
 0x3e5   : > { %2096 = vmatpush1.msra.mxu1 %v2835_v51  ;;  %v2849_v51 = vld [vmem:[%s4588_s7 + $0x148] sm:$0xff] }
 0x3e6   : > { %2097 = vmatprep.subr.mxu1 %v3248_v0 }
 0x3e7   : > { %2098 = vmatpush1.msra.mxu1 %v2834_v31  ;;  %v2848_v31 = vld [vmem:[%s4588_s7 + $0x140] sm:$0xff] }
 0x3e8   : > { %2099 = vmatprep.subr.mxu1 %v3248_v0 }
 0x3e9   : > { %2100 = vmatpush1.msra.mxu1 %v2833_v63  ;;  %v2867_v63 = vld [vmem:[%s4588_s7 + $0x1d8] sm:$0xff] }
 0x3ea   : > { %2101 = vmatprep.subr.mxu1 %v3248_v0 }
 0x3eb   : > { %2102 = vmatpush1.msra.mxu1 %v2832_v32  ;;  %v2866_v32 = vld [vmem:[%s4588_s7 + $0x1d0] sm:$0xff] }
 0x3ec   : > { %2103 = vmatprep.subr.mxu1 %v3248_v0 }
 0x3ed   : > { %2104 = vmatpush1.msra.mxu1 %v2831_v2  ;;  %v2865_v2 = vld [vmem:[%s4588_s7 + $0x1c8] sm:$0xff] }
 0x3ee   : > { %2105 = vmatprep.subr.mxu1 %v3248_v0 }
 0x3ef   : > { %2106 = vmatpush1.msra.mxu1 %v2830_v4  ;;  %v2864_v4 = vld [vmem:[%s4588_s7 + $0x1c0] sm:$0xff] }
 0x3f0   : > { %2107 = vmatprep.subr.mxu1 %v3248_v0 }
 0x3f1   : > { %2108 = vmatpush1.msra.mxu1 %v2829_v7 }
 0x3f2   : > { %2109 = vmatprep.subr.mxu1 %v3248_v0 }
 0x3f3   : > { %2110 = vmatpush1.msra.mxu1 %v2828_v8  ;;  %v2905_v8 = vld [vmem:[%s4588_s7 + $0x2f8] sm:$0xff] }
 0x3f4   : > { %2111 = vmatprep.subr.mxu1 %v3248_v0 }
 0x3f5   : > { %2112 = vmatpush1.msra.mxu1 %v2827_v10 }
 0x3f6   : > { %2137 = vmatprep.subr.mxu1 %v3248_v0 }
 0x3f7   : > { %2138 = vmatpush2.msra.mxu1 %v2846_v54  ;;  %v2903_v54 = vld [vmem:[%s4588_s7 + $0x2e8] sm:$0xff] }
 0x3f8   : > { %2139 = vmatprep.subr.mxu1 %v3248_v0 }
 0x3f9   : > { %2140 = vmatpush2.msra.mxu1 %v2845_v13  ;;  %v2901_v13 = vld [vmem:[%s4588_s7 + $0x2d8] sm:$0xff] }
 0x3fa   : > { %2141 = vmatprep.subr.mxu1 %v3248_v0 }
 0x3fb   : > { %2142 = vmatpush2.msra.mxu1 %v2844_v15  ;;  %v2898_v15 = vld [vmem:[%s4588_s7 + $0x2c0] sm:$0xff] }
 0x3fc   : > { %2143 = vmatprep.subr.mxu1 %v3248_v0 }
 0x3fd   : > { %2144 = vmatpush2.msra.mxu1 %v2843_v16  ;;  %v2897_v16 = vld [vmem:[%s4588_s7 + $0x2b8] sm:$0xff] }
 0x3fe   : > { %2275 = vmatprep.subr.mxu1 %v3248_v0 }
 0x496   : > { %v1941_v17 = vpop.f32.mrf.mxu1 }
 0x497   : > { %1948 = vrot.lane.b32.xlu1 %v1941_v17, %s3250_s16 }
 0x498   : > { %v1943_v19 = vpop.f32.mrf.mxu1 }
 0x499   : > { %1950 = vrot.lane.b32.xlu0 %v1943_v19, %s3250_s16  ;;  %s3171_s16 = scalar_lea.vmem %s3170_s21, 32 }
 0x49a   : > { %p3173_p8 = scmp.lt.s32.totalorder %s3171_s16, %s3165_s30 }
 0x49c   : > { %p3174_p11 = por %p3173_p8, %p3172_p7 }
 0x49e   : > { %p3175_p0 = pnand %p3174_p11, %p3168_p10 }
 0x509   : > { %v1949_v20 = vpop.permute.xlu1 %1948 }
 0x50b   : > { %v1951_v21 = vpop.permute.xlu0 %1950 }
 0x50c   : > { %v1953_v22 = vsel %vm1952_vm11, %v1949_v20, %v1951_v21  ;;  %v4266_v23 = vmax.f32 %v1943_v19, %v1951_v21  ;;  %v2895_v19 = vld [vmem:[%s4588_s7 + $0x2a8] sm:$0xff]  ;;  %v2894_v20 = vld [vmem:[%s4588_s7 + $0x2a0] sm:$0xff]  ;;  %v2893_v21 = vld [vmem:[%s4588_s7 + $0x298] sm:$0xff] }
 0x50d   : > { %v4268_v24 = vmax.f32 %v1941_v17, %v1953_v22  ;;  %v2896_v17 = vld [vmem:[%s4588_s7 + $0x2b0] sm:$0xff] }
 0x50e   : > { %2826 = vmatprep.mubr.msk.f32.mxu0 %vm1979_vm12, %v4266_v23  ;;  %v2077_v18 = vrot.slane %v4266_v23, 1  ;;  %v2174_v26 = vrot.slane %v4266_v23, 2  ;;  %v2271_v6 = vrot.slane %v4266_v23, 3  ;;  %v2368_v9 = vrot.slane %v4266_v23, 4  ;;  %v2892_v22 = vld [vmem:[%s4588_s7 + $0x290] sm:$0xff]  ;;  %v2891_v23 = vld [vmem:[%s4588_s7 + $0x288] sm:$0xff] }
 0x50f   : > { %2048 = vmatmul.mubr.f32.vlgmr.msra.gmra.mxu0 %v4268_v24  ;;  %v2076_v28 = vrot.slane %v4268_v24, 1  ;;  %v2173_v7 = vrot.slane %v4268_v24, 2  ;;  %v2270_v10 = vrot.slane %v4268_v24, 3 }
 0x510   : > { %2179 = vmatpush1.msra.mxu0 %v2863_v25  ;;  %2847 = vmatprep.mubr.msk.f32.mxu1 %vm1979_vm12, %v2077_v18  ;;  %v2890_v25 = vld [vmem:[%s4588_s7 + $0x280] sm:$0xff]  ;;  %v2909_v18 = vld [vmem:[%s4588_s7 + $0x318] sm:$0xff] }
 0x511   : > { %2180 = vmatprep.subr.mxu0 %v3248_v0  ;;  %2868 = vmatprep.mubr.msk.f32.mxu0 %vm1979_vm12, %v2174_v26  ;;  %v2908_v26 = vld [vmem:[%s4588_s7 + $0x310] sm:$0xff] }
 0x512   : > { %2146 = vmatmul.mubr.f32.vlgmr.msra.gmra.mxu1 %v2076_v28  ;;  %2181 = vmatpush1.msra.mxu0 %v2862_v29  ;;  %v2907_v28 = vld [vmem:[%s4588_s7 + $0x308] sm:$0xff]  ;;  %v2906_v29 = vld [vmem:[%s4588_s7 + $0x300] sm:$0xff] }
 0x513   : > { %2276 = vmatpush1.msra.mxu1 %v2884_v33  ;;  %2182 = vmatprep.subr.mxu0 %v3248_v0  ;;  %v2367_v33 = vrot.slane %v4268_v24, 4  ;;  %v2445_v24 = vld [vmem:[%s4590_s9 + $0x8] sm:$0xff] }
 0x514   : > { %2277 = vmatprep.subr.mxu1 %v3248_v0  ;;  %2889 = vmatprep.mubr.msk.f32.mxu1 %vm1979_vm12, %v2271_v6  ;;  %v2447_v6 = vld [vmem:[%s4590_s9 + $0x18] sm:$0xff] }
 0x515   : > { %2183 = vmatpush1.msra.mxu0 %v2861_v14  ;;  %2278 = vmatpush1.msra.mxu1 %v2883_v34  ;;  %v2446_v14 = vld [vmem:[%s4590_s9 + $0x10] sm:$0xff]  ;;  %v2444_v34 = vld [vmem:[%s4590_s9] sm:$0xff] }
 0x516   : > { %2184 = vmatprep.subr.mxu0 %v3248_v0  ;;  %2279 = vmatprep.subr.mxu1 %v3248_v0 }
 0x517   : > { %2185 = vmatpush1.msra.mxu0 %v2860_v37  ;;  %2280 = vmatpush1.msra.mxu1 %v2882_v38  ;;  %v1958_v37 = vld [vmem:[%s4589_s8] sm:$0x1] }
 0x518   : > { %2186 = vmatprep.subr.mxu0 %v3248_v0  ;;  %2281 = vmatprep.subr.mxu1 %v3248_v0 }
 0x519   : > { %2187 = vmatpush1.msra.mxu0 %v2859_v39  ;;  %2282 = vmatpush1.msra.mxu1 %v2881_v41 }
 0x51a   : > { %2188 = vmatprep.subr.mxu0 %v3248_v0  ;;  %2283 = vmatprep.subr.mxu1 %v3248_v0 }
 0x51b   : > { %2189 = vmatpush1.msra.mxu0 %v2858_v42  ;;  %2284 = vmatpush1.msra.mxu1 %v2880_v27 }
 0x51c   : > { %2190 = vmatprep.subr.mxu0 %v3248_v0  ;;  %2285 = vmatprep.subr.mxu1 %v3248_v0 }
 0x51d   : > { %2191 = vmatpush1.msra.mxu0 %v2857_v30  ;;  %2286 = vmatpush1.msra.mxu1 %v2879_v43 }
 0x51e   : > { %2192 = vmatprep.subr.mxu0 %v3248_v0  ;;  %2287 = vmatprep.subr.mxu1 %v3248_v0 }
 0x51f   : > { %2193 = vmatpush1.msra.mxu0 %v2856_v44  ;;  %2288 = vmatpush1.msra.mxu1 %v2878_v45 }
 0x520   : > { %2194 = vmatprep.subr.mxu0 %v3248_v0  ;;  %2289 = vmatprep.subr.mxu1 %v3248_v0 }
 0x521   : > { %2195 = vmatpush1.msra.mxu0 %v2855_v46  ;;  %2290 = vmatpush1.msra.mxu1 %v2877_v47 }
 0x522   : > { %2196 = vmatprep.subr.mxu0 %v3248_v0  ;;  %2291 = vmatprep.subr.mxu1 %v3248_v0 }
 0x523   : > { %2197 = vmatpush1.msra.mxu0 %v2854_v48  ;;  %2292 = vmatpush1.msra.mxu1 %v2876_v49 }
 0x524   : > { %2198 = vmatprep.subr.mxu0 %v3248_v0  ;;  %2293 = vmatprep.subr.mxu1 %v3248_v0 }
 0x525   : > { %2199 = vmatpush1.msra.mxu0 %v2853_v50  ;;  %2294 = vmatpush1.msra.mxu1 %v2875_v52 }
 0x526   : > { %2200 = vmatprep.subr.mxu0 %v3248_v0  ;;  %2295 = vmatprep.subr.mxu1 %v3248_v0 }
 0x527   : > { %2201 = vmatpush1.msra.mxu0 %v2852_v53  ;;  %2296 = vmatpush1.msra.mxu1 %v2874_v55  ;;  %v2448_v53 = vld [vmem:[%s4591_s10] sm:$0x1] }
 0x528   : > { %2202 = vmatprep.subr.mxu0 %v3248_v0  ;;  %2297 = vmatprep.subr.mxu1 %v3248_v0 }
 0x529   : > { %2203 = vmatpush1.msra.mxu0 %v2851_v56  ;;  %2298 = vmatpush1.msra.mxu1 %v2873_v57 }
 0x52a   : > { %2204 = vmatprep.subr.mxu0 %v3248_v0  ;;  %2299 = vmatprep.subr.mxu1 %v3248_v0 }
 0x52b   : > { %2205 = vmatpush1.msra.mxu0 %v2850_v58  ;;  %2300 = vmatpush1.msra.mxu1 %v2872_v59 }
 0x52c   : > { %2206 = vmatprep.subr.mxu0 %v3248_v0  ;;  %2301 = vmatprep.subr.mxu1 %v3248_v0 }
 0x52d   : > { %2207 = vmatpush1.msra.mxu0 %v2849_v51  ;;  %2302 = vmatpush1.msra.mxu1 %v2871_v60 }
 0x52e   : > { %2208 = vmatprep.subr.mxu0 %v3248_v0  ;;  %2303 = vmatprep.subr.mxu1 %v3248_v0 }
 0x52f   : > { %2209 = vmatpush1.msra.mxu0 %v2848_v31  ;;  %2304 = vmatpush1.msra.mxu1 %v2870_v61 }
 0x530   : > { %2234 = vmatprep.subr.mxu0 %v3248_v0  ;;  %2305 = vmatprep.subr.mxu1 %v3248_v0 }
 0x531   : > { %2235 = vmatpush2.msra.mxu0 %v2867_v63  ;;  %2306 = vmatpush1.msra.mxu1 %v2869_v1 }
 0x532   : > { %2236 = vmatprep.subr.mxu0 %v3248_v0  ;;  %2331 = vmatprep.subr.mxu1 %v3248_v0 }
 0x533   : > { %2237 = vmatpush2.msra.mxu0 %v2866_v32  ;;  %2332 = vmatpush2.msra.mxu1 %v2888_v40 }
 0x534   : > { %2238 = vmatprep.subr.mxu0 %v3248_v0  ;;  %2333 = vmatprep.subr.mxu1 %v3248_v0 }
 0x535   : > { %2239 = vmatpush2.msra.mxu0 %v2865_v2  ;;  %2334 = vmatpush2.msra.mxu1 %v2887_v3 }
 0x536   : > { %2240 = vmatprep.subr.mxu0 %v3248_v0  ;;  %2335 = vmatprep.subr.mxu1 %v3248_v0 }
 0x537   : > { %2241 = vmatpush2.msra.mxu0 %v2864_v4  ;;  %2336 = vmatpush2.msra.mxu1 %v2886_v5 }
 0x538   : > { %2243 = vmatmul.mubr.f32.vlgmr.msra.gmra.mxu0 %v2173_v7  ;;  %2337 = vmatprep.subr.mxu1 %v3248_v0 }
 0x539   : > { %2372 = vmatprep.subr.mxu0 %v3248_v0  ;;  %2338 = vmatpush2.msra.mxu1 %v2885_v36 }
 0x53a   : > { %2373 = vmatpush1.msra.mxu0 %v2905_v8  ;;  %2910 = vmatprep.mubr.msk.f32.mxu0 %vm1979_vm12, %v2368_v9 }
 0x53b   : > { %2340 = vmatmul.mubr.f32.vlgmr.msra.gmra.mxu1 %v2270_v10  ;;  %2374 = vmatprep.subr.mxu0 %v3248_v0 }
 0x53c   : > { %2375 = vmatpush1.msra.mxu0 %v2904_v11  ;;  %2920 = vmatprep.subr.mxu1 %v3248_v0 }
 0x53d   : > { %2376 = vmatprep.subr.mxu0 %v3248_v0  ;;  %2921 = vmatpush3.msra.mxu1 %v2447_v6 }
 0x53e   : > { %2377 = vmatpush1.msra.mxu0 %v2903_v54  ;;  %2922 = vmatprep.subr.mxu1 %v3248_v0 }
 0x53f   : > { %2378 = vmatprep.subr.mxu0 %v3248_v0  ;;  %2923 = vmatpush3.msra.mxu1 %v2446_v14 }
 0x540   : > { %2379 = vmatpush1.msra.mxu0 %v2902_v12  ;;  %2924 = vmatprep.subr.mxu1 %v3248_v0 }
 0x541   : > { %2380 = vmatprep.subr.mxu0 %v3248_v0  ;;  %2925 = vmatpush3.msra.mxu1 %v2445_v24 }
 0x542   : > { %2381 = vmatpush1.msra.mxu0 %v2901_v13  ;;  %2926 = vmatprep.subr.mxu1 %v3248_v0 }
 0x543   : > { %2382 = vmatprep.subr.mxu0 %v3248_v0  ;;  %2927 = vmatpush3.msra.mxu1 %v2444_v34 }
 0x544   : > { %2383 = vmatpush1.msra.mxu0 %v2900_v35  ;;  %2928 = vmatprep.mubr.msk.f32.mxu1 %vm3251_vm13, %v3248_v0 }
 0x545   : > { %2384 = vmatprep.subr.mxu0 %v3248_v0 }
 0x546   : > { %2385 = vmatpush1.msra.mxu0 %v2899_v62 }
 0x547   : > { %2386 = vmatprep.subr.mxu0 %v3248_v0 }
 0x548   : > { %2387 = vmatpush1.msra.mxu0 %v2898_v15 }
 0x549   : > { %2388 = vmatprep.subr.mxu0 %v3248_v0 }
 0x54a   : > { %2389 = vmatpush1.msra.mxu0 %v2897_v16 }
 0x54b   : > { %2390 = vmatprep.subr.mxu0 %v3248_v0 }
 0x54c   : > { %2391 = vmatpush1.msra.mxu0 %v2896_v17 }
 0x54d   : > { %2392 = vmatprep.subr.mxu0 %v3248_v0 }
 0x54e   : > { %2393 = vmatpush1.msra.mxu0 %v2895_v19 }
 0x54f   : > { %2394 = vmatprep.subr.mxu0 %v3248_v0 }
 0x550   : > { %2395 = vmatpush1.msra.mxu0 %v2894_v20 }
 0x551   : > { %2396 = vmatprep.subr.mxu0 %v3248_v0 }
 0x552   : > { %2397 = vmatpush1.msra.mxu0 %v2893_v21 }
 0x553   : > { %2398 = vmatprep.subr.mxu0 %v3248_v0 }
 0x554   : > { %2399 = vmatpush1.msra.mxu0 %v2892_v22 }
 0x555   : > { %2400 = vmatprep.subr.mxu0 %v3248_v0 }
 0x556   : > { %2401 = vmatpush1.msra.mxu0 %v2891_v23 }
 0x557   : > { %2402 = vmatprep.subr.mxu0 %v3248_v0 }
 0x558   : > { %2403 = vmatpush1.msra.mxu0 %v2890_v25 }
 0x559   : > { %2428 = vmatprep.subr.mxu0 %v3248_v0 }
 0x55a   : > { %2429 = vmatpush2.msra.mxu0 %v2909_v18 }
 0x55b   : > { %2430 = vmatprep.subr.mxu0 %v3248_v0 }
 0x55c   : > { %2431 = vmatpush2.msra.mxu0 %v2908_v26 }
 0x55d   : > { %2432 = vmatprep.subr.mxu0 %v3248_v0 }
 0x55e   : > { %2433 = vmatpush2.msra.mxu0 %v2907_v28 }
 0x55f   : > { %2434 = vmatprep.subr.mxu0 %v3248_v0 }
 0x560   : > { %2435 = vmatpush2.msra.mxu0 %v2906_v29 }
 0x561   : > { %2437 = vmatmul.mubr.f32.vlgmr.msra.gmra.mxu0 %v2367_v33 }
 0x5cf   : > { %v2049_v38 = vpop.f32.mrf.mxu0 }
 0x5d0   : > { %v2053_v39 = vadd.f32 %v2049_v38, %v1958_v37 }
 0x5d1   : > { %v2051_v41 = vpop.f32.mrf.mxu0 }
 0x5d2   : > { %v2147_v42 = vpop.f32.mrf.mxu1 }
 0x5d3   : > { %v2151_v27 = vadd.f32 %v2147_v42, %v2053_v39 }
 0x5d4   : > { %v2149_v30 = vpop.f32.mrf.mxu1 }
 0x5f8   : > { %v2244_v43 = vpop.f32.mrf.mxu0 }
 0x5f9   : > { %v2248_v47 = vadd.f32 %v2244_v43, %v2151_v27 }
 0x5fa   : > { %v2246_v44 = vpop.f32.mrf.mxu0 }
 0x5fb   : > { %v2341_v45 = vpop.f32.mrf.mxu1 }
 0x5fc   : > { %v2345_v48 = vadd.f32 %v2341_v45, %v2248_v47 }
 0x5fd   : > { %v2343_v46 = vpop.f32.mrf.mxu1 }
 0x621   : > { %v2438_v49 = vpop.f32.mrf.mxu0 }
 0x622   : > { %v2442_v0 = vadd.f32 %v2438_v49, %v2345_v48 }
 0x623   : > { %v2440_v50 = vpop.f32.mrf.mxu0 }
 0x624   : > { %v2443_v52 = vmax.f32 %v2442_v0, 0.0 }
 0x626   : > { %2929 = vmatmul.mubr.msk.f32.vlgmr.msra.gmra.mxu1 %vm1979_vm12, %v2443_v52 }
 0x6e6   : > { %v2518_v55 = vpop.f32.mrf.mxu1 }
 0x6e7   : > { %v2519_v56 = vadd.f32 %v2518_v55, %v2448_v53 }
 0x6e8   : > { %v2930_v57 = vpop.f32.mrf.mxu1 }
 0x6e9   : > { %v2522_v58 = vmax.f32 %v2519_v56, 0.0 }
 0x6eb   : > { %2524 = vst.msk [vmem:[%s445_s15] sm:$0x1] %vm2523_vm14, %v2522_v58 }
 0x6ec   : > { %3178 = shalt.err (!%p3175_p0)
}
 0x6ed   : > { %s3179_s14 = scalar_lea.hbm %s2536_s13, 16  ;;  %s3183_s29 = scalar_lea.hbm %s4592_s11, 32 }
 0x6ee   : > { %p3180_p13 = scmp.ne.s32.totalorder %s2536_s13, %s3179_s14  ;;  %p3184_p3 = scmp.lt.s32.totalorder %s2536_s13, %s4592_s11 }
 0x6ef   : > { %p3185_p12 = scmp.lt.s32.totalorder %s3183_s29, %s3179_s14 }
 0x6f0   : > { %p3181_p1 = pnand %p3180_p13, %p4613_p5 }
 0x6f1   : > { %p3186_p9 = por %p3185_p12, %p3184_p3 }
 0x6f2   : > { %p3182_p2 = pneg %p3181_p1 }
 0x6f4   : > { %p3187_p4 = pnand %p3186_p9, %p3182_p2 }
 0x6f6   : > { %3190 = shalt.err (!%p3187_p4)
}
 0x6f7   : > { %2952 = dma.vmem_to_hbm [thread:$0]  (%p4613_p5), %s2539_s24, 16, %s2536_s13, %s2526_s22  }
 0x6f8 PF: > { %p2984_p6 = scmp.ge.s32.totalorder %s3237_s20, 2  ;;  %s2550_s12 = sand.u32 1, %s3225_s17  }
 0x6f9   : > { %p4614_p10 = scmp.ne.s32.totalorder %s4600_s28, 0  ;;  %s2551_s30 = scalar_lea.sflag [#allocation4], %s2550_s12 }
 0x6fb   : > { %p2971_p7 = pnand %p2984_p6, %p4614_p10 }
 0x6fd   : > { %p2972_p8 = pneg %p2971_p7 }
 0x6ff   : > { %3220 = dma.done.wait (%p2972_p8), %s2551_s30, 16  }
 0x700   : > { %3222 = vsyncadd (%p2972_p8), %s2551_s30, 4294967280  ;;  %s4615_s26 = sld [smem:[#allocation16_spill]]  ;;  %p24_p11 = scmp.ge.s32.totalorder %s3338_s23, 4  }
 0x701   : > { %s4616_s17 = smov %s3229_s18  ;;  %s4617_s18 = smov %s3233_s19 }
 0x702   : > { %s4619_s20 = smov %s3338_s23  ;;  %26 = sbr.rel (!%p24_p11) target bundleno = 9 (0x9), region = 132 }
 0x706   : > { %s4618_s19 = smov %s4615_s26 }
 0x707   :  { %2555 = vsyncpa [#allocation3], 1 }
 0x708   :  { %2557 = vsyncpa [#allocation3 + $0x1], 1 }
 0x709   :  { %2558 = vsyncpa [#allocation6], 1 }
 0x70a   :  { %2559 = vsyncpa [#allocation9], 1 }
 0x70b   :  { %2560 = vsyncpa [#allocation4], 1 }
 0x70c   :  { %2562 = vsyncpa [#allocation4 + $0x1], 1 }

</bundles_post_ra>
